<compile_context>
chip_gen: v7x
topology: tpu7x:2x2x1
jax: 0.10.0
libtpu: 0.0.40
codegen_flags: <defaults>
</compile_context>

<pallas_src>
import jax
import jax.numpy as jnp
from jax.experimental import pallas as pl
from jax.experimental.pallas import tpu as pltpu  # noqa: F401  (TPU backend)

# ----------------------------- model config ---------------------------------
B = 2            # batch (len(texts))
S = 8            # max_length
H = 32           # dim_output (BERT hidden size, synthetic)
FF = 4 * H       # FFN intermediate size
E = 16           # dim_embed  (E != H  =>  self.linear is present)
VOCAB = 100
N_LAYERS = 2
LN_EPS = 1e-12   # BERT LayerNorm eps
NORM_EPS = 1e-12 # F.normalize eps


# --------------------------- fused Pallas kernel ------------------------------
def fused_encoder_kernel(x_ref,
                         wqkv_ref, bqkv_ref, wo_ref, w1_ref, b1_ref, w2_ref,
                         vecs_ref, lin_w_ref, lin_b_ref,
                         out_ref):
    """All N_LAYERS transformer layers + CLS head + L2-normalize, fused.

    x_ref:    (B*S, H)     tokens of all batches flattened along sublanes
    wqkv_ref: (L, H, 3H)   fused Q|K|V projection weights
    bqkv_ref: (L, 1, 3H)   fused Q|K|V biases
    wo_ref:   (L, H, H)    attention output projection
    w1_ref:   (L, H, FF)   FFN up
    b1_ref:   (L, 1, FF)
    w2_ref:   (L, FF, H)   FFN down
    vecs_ref: (L, 6, H)    rows: bo, ln1_g, ln1_b, b2, ln2_g, ln2_b
    lin_w_ref:(H, E)       CLS-head Linear(dim_output, dim_embed)
    lin_b_ref:(1, E)
    out_ref:  (B, E)
    """
    def layernorm(y, g, b):
        mu = jnp.mean(y, axis=-1, keepdims=True)
        var = jnp.mean((y - mu) ** 2, axis=-1, keepdims=True)
        return (y - mu) * jax.lax.rsqrt(var + LN_EPS) * g + b

    inv_sqrt_h = 1.0 / jnp.sqrt(jnp.float32(H))

    # (B*S, H): all dense layers see one wide 2-D operand (single MXU push each).
    h = x_ref[...]

    for l in range(N_LAYERS):                                     # static unroll
        wqkv = wqkv_ref[l]                                        # (H, 3H)
        bqkv = bqkv_ref[l]                                        # (1, 3H)
        wo = wo_ref[l]                                            # (H, H)
        w1 = w1_ref[l]                                            # (H, FF)
        b1 = b1_ref[l]                                            # (1, FF)
        w2 = w2_ref[l]                                            # (FF, H)
        bo = vecs_ref[l, 0:1, :]                                  # (1, H)
        ln1_g = vecs_ref[l, 1:2, :]
        ln1_b = vecs_ref[l, 2:3, :]
        b2 = vecs_ref[l, 3:4, :]
        ln2_g = vecs_ref[l, 4:5, :]
        ln2_b = vecs_ref[l, 5:6, :]

        # --- fused QKV projection for ALL tokens of ALL batches (one matmul) ---
        qkv = jnp.dot(h, wqkv, preferred_element_type=jnp.float32) + bqkv
        q = qkv[:, 0:H]
        k = qkv[:, H:2 * H]
        v = qkv[:, 2 * H:3 * H]

        # --- single-head self attention (per batch; scores must not mix batches) ---
        ctx_rows = []
        for b in range(B):                                        # B is tiny/static
            lo = b * S                                            # sublane-tile aligned
            qb = q[lo:lo + S, :]
            kb = k[lo:lo + S, :]
            vb = v[lo:lo + S, :]
            # scores[s, t] = qb[s, :] . kb[t, :]  (contract over hidden axis)
            scores = jax.lax.dot_general(
                qb, kb, (((1,), (1,)), ((), ())),
                preferred_element_type=jnp.float32) * inv_sqrt_h
            # TODO(synk): padding attention_mask not applied (synthetic inputs are unpadded)
            scores = scores - jnp.max(scores, axis=-1, keepdims=True)
            p = jnp.exp(scores)
            p = p / jnp.sum(p, axis=-1, keepdims=True)
            ctx_rows.append(jnp.dot(p, vb, preferred_element_type=jnp.float32))
        ctx = jnp.concatenate(ctx_rows, axis=0)                   # (B*S, H)

        attn_out = jnp.dot(ctx, wo, preferred_element_type=jnp.float32) + bo
        h1 = layernorm(h + attn_out, ln1_g, ln1_b)

        # --- feed-forward (all tokens, all batches at once) ---
        ffn_in = jnp.dot(h1, w1, preferred_element_type=jnp.float32) + b1
        ffn = jnp.dot(jax.nn.gelu(ffn_in, approximate=True), w2,
                      preferred_element_type=jnp.float32) + b2
        h = layernorm(h1 + ffn, ln2_g, ln2_b)

    # --- CLS head: gather CLS rows -> one matmul -> L2-normalize -> one store ---
    cls = jnp.concatenate([h[b * S:b * S + 1, :] for b in range(B)], axis=0)   # (B, H)
    y = jnp.dot(cls, lin_w_ref[...], preferred_element_type=jnp.float32) + lin_b_ref[...]
    ss = jnp.sum(y * y, axis=-1, keepdims=True)                   # (B, 1)
    # 1 / max(||y||, eps)  ==  rsqrt(max(ss, eps^2))   (EUP, no divide)
    y = y * jax.lax.rsqrt(jnp.maximum(ss, NORM_EPS * NORM_EPS))
    out_ref[...] = y                                              # single dense store


# ----------------------------- wrapper ---------------------------------------
def run_fused_encoder(x, packed):
    """Single pallas_call: no grid, every operand VMEM-resident (~100 KB total)."""
    x_flat = x.reshape(B * S, H)                                  # free layout plumbing in XLA
    return pl.pallas_call(
        fused_encoder_kernel,
        out_shape=jax.ShapeDtypeStruct((B, E), jnp.float32),
    )(x_flat, packed["wqkv"], packed["bqkv"], packed["wo"], packed["w1"],
      packed["b1"], packed["w2"], packed["vecs"], packed["lin_w"],
      packed["lin_b"])


# ------------------------- parameter construction ----------------------------
def init_params(key):
    keys = iter(jax.random.split(key, 64))
    scale = 0.02

    def mat(shape):
        return (scale * jax.random.normal(next(keys), shape)).astype(jnp.float32)

    params = {
        "tok_emb": mat((VOCAB, H)),
        "pos_emb": mat((S, H)),
        "layers": [],
        "lin_w": mat((H, E)),
        "lin_b": mat((1, E)),
    }
    for _ in range(N_LAYERS):
        lp = {
            "wq": mat((H, H)),  "bq": mat((1, H)),
            "wk": mat((H, H)),  "bk": mat((1, H)),
            "wv": mat((H, H)),  "bv": mat((1, H)),
            "wo": mat((H, H)),  "bo": mat((1, H)),
            "ln1_g": (1.0 + mat((1, H))).astype(jnp.float32),
            "ln1_b": mat((1, H)),
            "w1": mat((H, FF)), "b1": mat((1, FF)),
            "w2": mat((FF, H)), "b2": mat((1, H)),
            "ln2_g": (1.0 + mat((1, H))).astype(jnp.float32),
            "ln2_b": mat((1, H)),
        }
        params["layers"].append(lp)
    return params


def pack_params(params):
    """Stack per-layer params into a few contiguous kernel inputs."""
    layers = params["layers"]

    def stack(fn):
        return jnp.stack([fn(lp) for lp in layers], axis=0)

    return {
        "wqkv": stack(lambda lp: jnp.concatenate(
            [lp["wq"], lp["wk"], lp["wv"]], axis=1)),              # (L, H, 3H)
        "bqkv": stack(lambda lp: jnp.concatenate(
            [lp["bq"], lp["bk"], lp["bv"]], axis=1)),              # (L, 1, 3H)
        "wo": stack(lambda lp: lp["wo"]),                          # (L, H, H)
        "w1": stack(lambda lp: lp["w1"]),                          # (L, H, FF)
        "b1": stack(lambda lp: lp["b1"]),                          # (L, 1, FF)
        "w2": stack(lambda lp: lp["w2"]),                          # (L, FF, H)
        "vecs": stack(lambda lp: jnp.concatenate(
            [lp["bo"], lp["ln1_g"], lp["ln1_b"],
             lp["b2"], lp["ln2_g"], lp["ln2_b"]], axis=0)),        # (L, 6, H)
        "lin_w": params["lin_w"],                                  # (H, E)
        "lin_b": params["lin_b"],                                  # (1, E)
    }


def base_bert_encoder_forward(token_ids, params, packed):
    """Synthetic equivalent of BaseBertEncoder.forward (eval mode, no dropout)."""
    # Embedding lookup (plain-JAX glue).
    # TODO(synk): HF tokenizer + pretrained checkpoint load have no Pallas
    # equivalent; token ids are synthetic and weights are randomly initialized.
    x = (jnp.take(params["tok_emb"], token_ids, axis=0)
         + params["pos_emb"][None]).astype(jnp.float32)
    return run_fused_encoder(x, packed)          # Pallas: full encoder + CLS head


# ------------------------------ reference ------------------------------------
def reference_forward(token_ids, params):
    x = jnp.take(params["tok_emb"], token_ids, axis=0) + params["pos_emb"][None]

    def ln(y, g, b):
        mu = jnp.mean(y, -1, keepdims=True)
        var = jnp.mean((y - mu) ** 2, -1, keepdims=True)
        return (y - mu) * jax.lax.rsqrt(var + LN_EPS) * g + b

    for lp in params["layers"]:
        q = x @ lp["wq"] + lp["bq"]
        k = x @ lp["wk"] + lp["bk"]
        v = x @ lp["wv"] + lp["bv"]
        s = jnp.einsum("bsh,bth->bst", q, k) / jnp.sqrt(jnp.float32(H))
        p = jax.nn.softmax(s, axis=-1)
        ctx = jnp.einsum("bst,bth->bsh", p, v)
        h1 = ln(x + (ctx @ lp["wo"] + lp["bo"]), lp["ln1_g"], lp["ln1_b"])
        ffn = jax.nn.gelu(h1 @ lp["w1"] + lp["b1"], approximate=True) @ lp["w2"] + lp["b2"]
        x = ln(h1 + ffn, lp["ln2_g"], lp["ln2_b"])
    cls = x[:, 0, :]
    y = cls @ params["lin_w"] + params["lin_b"]
    return y / jnp.maximum(jnp.linalg.norm(y, axis=1, keepdims=True), NORM_EPS)


# --------------------------------- main ---------------------------------------
if __name__ == "__main__":
    key = jax.random.PRNGKey(0)
    k_par, k_tok = jax.random.split(key)
    params = init_params(k_par)
    packed = pack_params(params)
    token_ids = jax.random.randint(k_tok, (B, S), 0, VOCAB)   # synthetic "tokenize"

    out = base_bert_encoder_forward(token_ids, params, packed)
    out = jax.block_until_ready(out)

    ref = reference_forward(token_ids, params)

    assert out.shape == (B, E), out.shape
    assert bool(jnp.all(jnp.isfinite(out)))
    # rows are L2-normalized
    assert bool(jnp.allclose(jnp.linalg.norm(out, axis=1), 1.0, atol=1e-5))
    assert bool(jnp.allclose(out, ref, rtol=1e-4, atol=1e-4))

    print("KERNEL_OK")
</pallas_src>

<mosaic_0001>
module attributes {stable_mosaic.version = 11 : i64} {
  func.func @fused_encoder_kernel(%arg0: memref<16x32xf32, #tpu.memory_space<vmem>>, %arg1: memref<2x32x96xf32, #tpu.memory_space<vmem>>, %arg2: memref<2x1x96xf32, #tpu.memory_space<vmem>>, %arg3: memref<2x32x32xf32, #tpu.memory_space<vmem>>, %arg4: memref<2x32x128xf32, #tpu.memory_space<vmem>>, %arg5: memref<2x1x128xf32, #tpu.memory_space<vmem>>, %arg6: memref<2x128x32xf32, #tpu.memory_space<vmem>>, %arg7: memref<2x6x32xf32, #tpu.memory_space<vmem>>, %arg8: memref<32x16xf32, #tpu.memory_space<vmem>>, %arg9: memref<1x16xf32, #tpu.memory_space<vmem>>, %arg10: memref<2x16xf32, #tpu.memory_space<vmem>>) attributes {dimension_semantics = [], scalar_prefetch = 0 : i64, scratch_operands = 0 : i64, tpu.core_type = #tpu.core_type<tc>} {
    %cst = arith.constant 3.200000e+01 : f32
    %0 = math.sqrt %cst : f32
    %cst_0 = arith.constant 1.000000e+00 : f32
    %1 = arith.divf %cst_0, %0 : f32
    %c0 = arith.constant 0 : index
    %c0_1 = arith.constant 0 : index
    %2 = vector.load %arg0[%c0, %c0_1] : memref<16x32xf32, #tpu.memory_space<vmem>>, vector<16x32xf32>
    %c0_2 = arith.constant 0 : index
    %c0_3 = arith.constant 0 : index
    %c0_4 = arith.constant 0 : index
    %3 = vector.load %arg1[%c0_2, %c0_3, %c0_4] : memref<2x32x96xf32, #tpu.memory_space<vmem>>, vector<1x32x96xf32>
    %4 = vector.shape_cast %3 : vector<1x32x96xf32> to vector<32x96xf32>
    %c0_5 = arith.constant 0 : index
    %c0_6 = arith.constant 0 : index
    %c0_7 = arith.constant 0 : index
    %5 = vector.load %arg2[%c0_5, %c0_6, %c0_7] : memref<2x1x96xf32, #tpu.memory_space<vmem>>, vector<1x1x96xf32>
    %6 = vector.shape_cast %5 : vector<1x1x96xf32> to vector<1x96xf32>
    %c0_8 = arith.constant 0 : index
    %c0_9 = arith.constant 0 : index
    %c0_10 = arith.constant 0 : index
    %7 = vector.load %arg3[%c0_8, %c0_9, %c0_10] : memref<2x32x32xf32, #tpu.memory_space<vmem>>, vector<1x32x32xf32>
    %8 = vector.shape_cast %7 : vector<1x32x32xf32> to vector<32x32xf32>
    %c0_11 = arith.constant 0 : index
    %c0_12 = arith.constant 0 : index
    %c0_13 = arith.constant 0 : index
    %9 = vector.load %arg4[%c0_11, %c0_12, %c0_13] : memref<2x32x128xf32, #tpu.memory_space<vmem>>, vector<1x32x128xf32>
    %10 = vector.shape_cast %9 : vector<1x32x128xf32> to vector<32x128xf32>
    %c0_14 = arith.constant 0 : index
    %c0_15 = arith.constant 0 : index
    %c0_16 = arith.constant 0 : index
    %11 = vector.load %arg5[%c0_14, %c0_15, %c0_16] : memref<2x1x128xf32, #tpu.memory_space<vmem>>, vector<1x1x128xf32>
    %12 = vector.shape_cast %11 : vector<1x1x128xf32> to vector<1x128xf32>
    %c0_17 = arith.constant 0 : index
    %c0_18 = arith.constant 0 : index
    %c0_19 = arith.constant 0 : index
    %13 = vector.load %arg6[%c0_17, %c0_18, %c0_19] : memref<2x128x32xf32, #tpu.memory_space<vmem>>, vector<1x128x32xf32>
    %14 = vector.shape_cast %13 : vector<1x128x32xf32> to vector<128x32xf32>
    %c0_20 = arith.constant 0 : index
    %c0_21 = arith.constant 0 : index
    %c0_22 = arith.constant 0 : index
    %15 = vector.load %arg7[%c0_20, %c0_21, %c0_22] : memref<2x6x32xf32, #tpu.memory_space<vmem>>, vector<1x1x32xf32>
    %16 = vector.shape_cast %15 : vector<1x1x32xf32> to vector<1x32xf32>
    %c0_23 = arith.constant 0 : index
    %c1 = arith.constant 1 : index
    %c0_24 = arith.constant 0 : index
    %17 = vector.load %arg7[%c0_23, %c1, %c0_24] : memref<2x6x32xf32, #tpu.memory_space<vmem>>, vector<1x1x32xf32>
    %18 = vector.shape_cast %17 : vector<1x1x32xf32> to vector<1x32xf32>
    %c0_25 = arith.constant 0 : index
    %c2 = arith.constant 2 : index
    %c0_26 = arith.constant 0 : index
    %19 = vector.load %arg7[%c0_25, %c2, %c0_26] : memref<2x6x32xf32, #tpu.memory_space<vmem>>, vector<1x1x32xf32>
    %20 = vector.shape_cast %19 : vector<1x1x32xf32> to vector<1x32xf32>
    %c0_27 = arith.constant 0 : index
    %c3 = arith.constant 3 : index
    %c0_28 = arith.constant 0 : index
    %21 = vector.load %arg7[%c0_27, %c3, %c0_28] : memref<2x6x32xf32, #tpu.memory_space<vmem>>, vector<1x1x32xf32>
    %22 = vector.shape_cast %21 : vector<1x1x32xf32> to vector<1x32xf32>
    %c0_29 = arith.constant 0 : index
    %c4 = arith.constant 4 : index
    %c0_30 = arith.constant 0 : index
    %23 = vector.load %arg7[%c0_29, %c4, %c0_30] : memref<2x6x32xf32, #tpu.memory_space<vmem>>, vector<1x1x32xf32>
    %24 = vector.shape_cast %23 : vector<1x1x32xf32> to vector<1x32xf32>
    %c0_31 = arith.constant 0 : index
    %c5 = arith.constant 5 : index
    %c0_32 = arith.constant 0 : index
    %25 = vector.load %arg7[%c0_31, %c5, %c0_32] : memref<2x6x32xf32, #tpu.memory_space<vmem>>, vector<1x1x32xf32>
    %26 = vector.shape_cast %25 : vector<1x1x32xf32> to vector<1x32xf32>
    %cst_33 = arith.constant dense<0.000000e+00> : vector<16x96xf32>
    %27 = tpu.matmul %2, %4, %cst_33 {dimension_numbers = #tpu.dot_dimension_numbers<[1], [0], [0], [1], [0, 0, 1, 1], [], []>} : vector<16x32xf32>, vector<32x96xf32>, vector<16x96xf32> -> vector<16x96xf32>
    %28 = vector.broadcast %6 : vector<1x96xf32> to vector<16x96xf32>
    %29 = arith.addf %27, %28 : vector<16x96xf32>
    %30 = vector.extract_strided_slice %29 {offsets = [0, 0], sizes = [16, 32], strides = [1, 1]} : vector<16x96xf32> to vector<16x32xf32>
    %31 = vector.extract_strided_slice %29 {offsets = [0, 32], sizes = [16, 32], strides = [1, 1]} : vector<16x96xf32> to vector<16x32xf32>
    %32 = vector.extract_strided_slice %29 {offsets = [0, 64], sizes = [16, 32], strides = [1, 1]} : vector<16x96xf32> to vector<16x32xf32>
    %33 = vector.extract_strided_slice %30 {offsets = [0, 0], sizes = [8, 32], strides = [1, 1]} : vector<16x32xf32> to vector<8x32xf32>
    %34 = vector.extract_strided_slice %31 {offsets = [0, 0], sizes = [8, 32], strides = [1, 1]} : vector<16x32xf32> to vector<8x32xf32>
    %35 = vector.extract_strided_slice %32 {offsets = [0, 0], sizes = [8, 32], strides = [1, 1]} : vector<16x32xf32> to vector<8x32xf32>
    %cst_34 = arith.constant dense<0.000000e+00> : vector<8x8xf32>
    %36 = tpu.matmul %33, %34, %cst_34 {dimension_numbers = #tpu.dot_dimension_numbers<[1], [1], [0], [0], [0, 0, 1, 0], [], []>} : vector<8x32xf32>, vector<8x32xf32>, vector<8x8xf32> -> vector<8x8xf32>
    %37 = vector.broadcast %1 : f32 to vector<8x8xf32>
    %38 = arith.mulf %36, %37 : vector<8x8xf32>
    %cst_35 = arith.constant dense<0xFF800000> : vector<8xf32>
    %39 = vector.multi_reduction <maximumf>, %38, %cst_35 [1] : vector<8x8xf32> to vector<8xf32>
    %40 = vector.shape_cast %39 : vector<8xf32> to vector<8x1xf32>
    %41 = vector.broadcast %40 : vector<8x1xf32> to vector<8x8xf32>
    %42 = arith.subf %38, %41 : vector<8x8xf32>
    %43 = math.exp %42 : vector<8x8xf32>
    %cst_36 = arith.constant dense<0.000000e+00> : vector<8xf32>
    %44 = vector.multi_reduction <add>, %43, %cst_36 [1] : vector<8x8xf32> to vector<8xf32>
    %45 = vector.shape_cast %44 : vector<8xf32> to vector<8x1xf32>
    %46 = vector.broadcast %45 : vector<8x1xf32> to vector<8x8xf32>
    %47 = arith.divf %43, %46 : vector<8x8xf32>
    %cst_37 = arith.constant dense<0.000000e+00> : vector<8x32xf32>
    %48 = tpu.matmul %47, %35, %cst_37 {dimension_numbers = #tpu.dot_dimension_numbers<[1], [0], [0], [1], [0, 0, 1, 1], [], []>} : vector<8x8xf32>, vector<8x32xf32>, vector<8x32xf32> -> vector<8x32xf32>
    %49 = vector.extract_strided_slice %30 {offsets = [8, 0], sizes = [8, 32], strides = [1, 1]} : vector<16x32xf32> to vector<8x32xf32>
    %50 = vector.extract_strided_slice %31 {offsets = [8, 0], sizes = [8, 32], strides = [1, 1]} : vector<16x32xf32> to vector<8x32xf32>
    %51 = vector.extract_strided_slice %32 {offsets = [8, 0], sizes = [8, 32], strides = [1, 1]} : vector<16x32xf32> to vector<8x32xf32>
    %cst_38 = arith.constant dense<0.000000e+00> : vector<8x8xf32>
    %52 = tpu.matmul %49, %50, %cst_38 {dimension_numbers = #tpu.dot_dimension_numbers<[1], [1], [0], [0], [0, 0, 1, 0], [], []>} : vector<8x32xf32>, vector<8x32xf32>, vector<8x8xf32> -> vector<8x8xf32>
    %53 = vector.broadcast %1 : f32 to vector<8x8xf32>
    %54 = arith.mulf %52, %53 : vector<8x8xf32>
    %cst_39 = arith.constant dense<0xFF800000> : vector<8xf32>
    %55 = vector.multi_reduction <maximumf>, %54, %cst_39 [1] : vector<8x8xf32> to vector<8xf32>
    %56 = vector.shape_cast %55 : vector<8xf32> to vector<8x1xf32>
    %57 = vector.broadcast %56 : vector<8x1xf32> to vector<8x8xf32>
    %58 = arith.subf %54, %57 : vector<8x8xf32>
    %59 = math.exp %58 : vector<8x8xf32>
    %cst_40 = arith.constant dense<0.000000e+00> : vector<8xf32>
    %60 = vector.multi_reduction <add>, %59, %cst_40 [1] : vector<8x8xf32> to vector<8xf32>
    %61 = vector.shape_cast %60 : vector<8xf32> to vector<8x1xf32>
    %62 = vector.broadcast %61 : vector<8x1xf32> to vector<8x8xf32>
    %63 = arith.divf %59, %62 : vector<8x8xf32>
    %cst_41 = arith.constant dense<0.000000e+00> : vector<8x32xf32>
    %64 = tpu.matmul %63, %51, %cst_41 {dimension_numbers = #tpu.dot_dimension_numbers<[1], [0], [0], [1], [0, 0, 1, 1], [], []>} : vector<8x8xf32>, vector<8x32xf32>, vector<8x32xf32> -> vector<8x32xf32>
    %65 = tpu.concatenate %48, %64 in 0 : vector<8x32xf32>, vector<8x32xf32> -> vector<16x32xf32>
    %cst_42 = arith.constant dense<0.000000e+00> : vector<16x32xf32>
    %66 = tpu.matmul %65, %8, %cst_42 {dimension_numbers = #tpu.dot_dimension_numbers<[1], [0], [0], [1], [0, 0, 1, 1], [], []>} : vector<16x32xf32>, vector<32x32xf32>, vector<16x32xf32> -> vector<16x32xf32>
    %67 = vector.broadcast %16 : vector<1x32xf32> to vector<16x32xf32>
    %68 = arith.addf %66, %67 : vector<16x32xf32>
    %69 = arith.addf %2, %68 : vector<16x32xf32>
    %cst_43 = arith.constant dense<0.000000e+00> : vector<16xf32>
    %70 = vector.multi_reduction <add>, %69, %cst_43 [1] : vector<16x32xf32> to vector<16xf32>
    %71 = vector.shape_cast %70 : vector<16xf32> to vector<16x1xf32>
    %cst_44 = arith.constant 3.200000e+01 : f32
    %72 = vector.broadcast %cst_44 : f32 to vector<16x1xf32>
    %73 = arith.divf %71, %72 : vector<16x1xf32>
    %74 = vector.broadcast %73 : vector<16x1xf32> to vector<16x32xf32>
    %75 = arith.subf %69, %74 : vector<16x32xf32>
    %76 = arith.mulf %75, %75 : vector<16x32xf32>
    %cst_45 = arith.constant dense<0.000000e+00> : vector<16xf32>
    %77 = vector.multi_reduction <add>, %76, %cst_45 [1] : vector<16x32xf32> to vector<16xf32>
    %78 = vector.shape_cast %77 : vector<16xf32> to vector<16x1xf32>
    %cst_46 = arith.constant 3.200000e+01 : f32
    %79 = vector.broadcast %cst_46 : f32 to vector<16x1xf32>
    %80 = arith.divf %78, %79 : vector<16x1xf32>
    %81 = vector.broadcast %73 : vector<16x1xf32> to vector<16x32xf32>
    %82 = arith.subf %69, %81 : vector<16x32xf32>
    %cst_47 = arith.constant 9.99999996E-13 : f32
    %83 = vector.broadcast %cst_47 : f32 to vector<16x1xf32>
    %84 = arith.addf %80, %83 : vector<16x1xf32>
    %85 = math.rsqrt %84 : vector<16x1xf32>
    %86 = vector.broadcast %85 : vector<16x1xf32> to vector<16x32xf32>
    %87 = arith.mulf %82, %86 : vector<16x32xf32>
    %88 = vector.broadcast %18 : vector<1x32xf32> to vector<16x32xf32>
    %89 = arith.mulf %87, %88 : vector<16x32xf32>
    %90 = vector.broadcast %20 : vector<1x32xf32> to vector<16x32xf32>
    %91 = arith.addf %89, %90 : vector<16x32xf32>
    %cst_48 = arith.constant dense<0.000000e+00> : vector<16x128xf32>
    %92 = tpu.matmul %91, %10, %cst_48 {dimension_numbers = #tpu.dot_dimension_numbers<[1], [0], [0], [1], [0, 0, 1, 1], [], []>} : vector<16x32xf32>, vector<32x128xf32>, vector<16x128xf32> -> vector<16x128xf32>
    %93 = vector.broadcast %12 : vector<1x128xf32> to vector<16x128xf32>
    %94 = arith.addf %92, %93 : vector<16x128xf32>
    %95 = arith.mulf %94, %94 : vector<16x128xf32>
    %96 = arith.mulf %94, %95 : vector<16x128xf32>
    %cst_49 = arith.constant 4.471500e-02 : f32
    %97 = vector.broadcast %cst_49 : f32 to vector<16x128xf32>
    %98 = arith.mulf %97, %96 : vector<16x128xf32>
    %99 = arith.addf %94, %98 : vector<16x128xf32>
    %cst_50 = arith.constant 0.797884583 : f32
    %100 = vector.broadcast %cst_50 : f32 to vector<16x128xf32>
    %101 = arith.mulf %100, %99 : vector<16x128xf32>
    %102 = math.tanh %101 : vector<16x128xf32>
    %cst_51 = arith.constant 1.000000e+00 : f32
    %103 = vector.broadcast %cst_51 : f32 to vector<16x128xf32>
    %104 = arith.addf %103, %102 : vector<16x128xf32>
    %cst_52 = arith.constant 5.000000e-01 : f32
    %105 = vector.broadcast %cst_52 : f32 to vector<16x128xf32>
    %106 = arith.mulf %105, %104 : vector<16x128xf32>
    %107 = arith.mulf %94, %106 : vector<16x128xf32>
    %cst_53 = arith.constant dense<0.000000e+00> : vector<16x32xf32>
    %108 = tpu.matmul %107, %14, %cst_53 {dimension_numbers = #tpu.dot_dimension_numbers<[1], [0], [0], [1], [0, 0, 1, 1], [], []>} : vector<16x128xf32>, vector<128x32xf32>, vector<16x32xf32> -> vector<16x32xf32>
    %109 = vector.broadcast %22 : vector<1x32xf32> to vector<16x32xf32>
    %110 = arith.addf %108, %109 : vector<16x32xf32>
    %111 = arith.addf %91, %110 : vector<16x32xf32>
    %cst_54 = arith.constant dense<0.000000e+00> : vector<16xf32>
    %112 = vector.multi_reduction <add>, %111, %cst_54 [1] : vector<16x32xf32> to vector<16xf32>
    %113 = vector.shape_cast %112 : vector<16xf32> to vector<16x1xf32>
    %cst_55 = arith.constant 3.200000e+01 : f32
    %114 = vector.broadcast %cst_55 : f32 to vector<16x1xf32>
    %115 = arith.divf %113, %114 : vector<16x1xf32>
    %116 = vector.broadcast %115 : vector<16x1xf32> to vector<16x32xf32>
    %117 = arith.subf %111, %116 : vector<16x32xf32>
    %118 = arith.mulf %117, %117 : vector<16x32xf32>
    %cst_56 = arith.constant dense<0.000000e+00> : vector<16xf32>
    %119 = vector.multi_reduction <add>, %118, %cst_56 [1] : vector<16x32xf32> to vector<16xf32>
    %120 = vector.shape_cast %119 : vector<16xf32> to vector<16x1xf32>
    %cst_57 = arith.constant 3.200000e+01 : f32
    %121 = vector.broadcast %cst_57 : f32 to vector<16x1xf32>
    %122 = arith.divf %120, %121 : vector<16x1xf32>
    %123 = vector.broadcast %115 : vector<16x1xf32> to vector<16x32xf32>
    %124 = arith.subf %111, %123 : vector<16x32xf32>
    %cst_58 = arith.constant 9.99999996E-13 : f32
    %125 = vector.broadcast %cst_58 : f32 to vector<16x1xf32>
    %126 = arith.addf %122, %125 : vector<16x1xf32>
    %127 = math.rsqrt %126 : vector<16x1xf32>
    %128 = vector.broadcast %127 : vector<16x1xf32> to vector<16x32xf32>
    %129 = arith.mulf %124, %128 : vector<16x32xf32>
    %130 = vector.broadcast %24 : vector<1x32xf32> to vector<16x32xf32>
    %131 = arith.mulf %129, %130 : vector<16x32xf32>
    %132 = vector.broadcast %26 : vector<1x32xf32> to vector<16x32xf32>
    %133 = arith.addf %131, %132 : vector<16x32xf32>
    %c1_59 = arith.constant 1 : index
    %c0_60 = arith.constant 0 : index
    %c0_61 = arith.constant 0 : index
    %134 = vector.load %arg1[%c1_59, %c0_60, %c0_61] : memref<2x32x96xf32, #tpu.memory_space<vmem>>, vector<1x32x96xf32>
    %135 = vector.shape_cast %134 : vector<1x32x96xf32> to vector<32x96xf32>
    %c1_62 = arith.constant 1 : index
    %c0_63 = arith.constant 0 : index
    %c0_64 = arith.constant 0 : index
    %136 = vector.load %arg2[%c1_62, %c0_63, %c0_64] : memref<2x1x96xf32, #tpu.memory_space<vmem>>, vector<1x1x96xf32>
    %137 = vector.shape_cast %136 : vector<1x1x96xf32> to vector<1x96xf32>
    %c1_65 = arith.constant 1 : index
    %c0_66 = arith.constant 0 : index
    %c0_67 = arith.constant 0 : index
    %138 = vector.load %arg3[%c1_65, %c0_66, %c0_67] : memref<2x32x32xf32, #tpu.memory_space<vmem>>, vector<1x32x32xf32>
    %139 = vector.shape_cast %138 : vector<1x32x32xf32> to vector<32x32xf32>
    %c1_68 = arith.constant 1 : index
    %c0_69 = arith.constant 0 : index
    %c0_70 = arith.constant 0 : index
    %140 = vector.load %arg4[%c1_68, %c0_69, %c0_70] : memref<2x32x128xf32, #tpu.memory_space<vmem>>, vector<1x32x128xf32>
    %141 = vector.shape_cast %140 : vector<1x32x128xf32> to vector<32x128xf32>
    %c1_71 = arith.constant 1 : index
    %c0_72 = arith.constant 0 : index
    %c0_73 = arith.constant 0 : index
    %142 = vector.load %arg5[%c1_71, %c0_72, %c0_73] : memref<2x1x128xf32, #tpu.memory_space<vmem>>, vector<1x1x128xf32>
    %143 = vector.shape_cast %142 : vector<1x1x128xf32> to vector<1x128xf32>
    %c1_74 = arith.constant 1 : index
    %c0_75 = arith.constant 0 : index
    %c0_76 = arith.constant 0 : index
    %144 = vector.load %arg6[%c1_74, %c0_75, %c0_76] : memref<2x128x32xf32, #tpu.memory_space<vmem>>, vector<1x128x32xf32>
    %145 = vector.shape_cast %144 : vector<1x128x32xf32> to vector<128x32xf32>
    %c1_77 = arith.constant 1 : index
    %c0_78 = arith.constant 0 : index
    %c0_79 = arith.constant 0 : index
    %146 = vector.load %arg7[%c1_77, %c0_78, %c0_79] : memref<2x6x32xf32, #tpu.memory_space<vmem>>, vector<1x1x32xf32>
    %147 = vector.shape_cast %146 : vector<1x1x32xf32> to vector<1x32xf32>
    %c1_80 = arith.constant 1 : index
    %c1_81 = arith.constant 1 : index
    %c0_82 = arith.constant 0 : index
    %148 = vector.load %arg7[%c1_80, %c1_81, %c0_82] : memref<2x6x32xf32, #tpu.memory_space<vmem>>, vector<1x1x32xf32>
    %149 = vector.shape_cast %148 : vector<1x1x32xf32> to vector<1x32xf32>
    %c1_83 = arith.constant 1 : index
    %c2_84 = arith.constant 2 : index
    %c0_85 = arith.constant 0 : index
    %150 = vector.load %arg7[%c1_83, %c2_84, %c0_85] : memref<2x6x32xf32, #tpu.memory_space<vmem>>, vector<1x1x32xf32>
    %151 = vector.shape_cast %150 : vector<1x1x32xf32> to vector<1x32xf32>
    %c1_86 = arith.constant 1 : index
    %c3_87 = arith.constant 3 : index
    %c0_88 = arith.constant 0 : index
    %152 = vector.load %arg7[%c1_86, %c3_87, %c0_88] : memref<2x6x32xf32, #tpu.memory_space<vmem>>, vector<1x1x32xf32>
    %153 = vector.shape_cast %152 : vector<1x1x32xf32> to vector<1x32xf32>
    %c1_89 = arith.constant 1 : index
    %c4_90 = arith.constant 4 : index
    %c0_91 = arith.constant 0 : index
    %154 = vector.load %arg7[%c1_89, %c4_90, %c0_91] : memref<2x6x32xf32, #tpu.memory_space<vmem>>, vector<1x1x32xf32>
    %155 = vector.shape_cast %154 : vector<1x1x32xf32> to vector<1x32xf32>
    %c1_92 = arith.constant 1 : index
    %c5_93 = arith.constant 5 : index
    %c0_94 = arith.constant 0 : index
    %156 = vector.load %arg7[%c1_92, %c5_93, %c0_94] : memref<2x6x32xf32, #tpu.memory_space<vmem>>, vector<1x1x32xf32>
    %157 = vector.shape_cast %156 : vector<1x1x32xf32> to vector<1x32xf32>
    %cst_95 = arith.constant dense<0.000000e+00> : vector<16x96xf32>
    %158 = tpu.matmul %133, %135, %cst_95 {dimension_numbers = #tpu.dot_dimension_numbers<[1], [0], [0], [1], [0, 0, 1, 1], [], []>} : vector<16x32xf32>, vector<32x96xf32>, vector<16x96xf32> -> vector<16x96xf32>
    %159 = vector.broadcast %137 : vector<1x96xf32> to vector<16x96xf32>
    %160 = arith.addf %158, %159 : vector<16x96xf32>
    %161 = vector.extract_strided_slice %160 {offsets = [0, 0], sizes = [16, 32], strides = [1, 1]} : vector<16x96xf32> to vector<16x32xf32>
    %162 = vector.extract_strided_slice %160 {offsets = [0, 32], sizes = [16, 32], strides = [1, 1]} : vector<16x96xf32> to vector<16x32xf32>
    %163 = vector.extract_strided_slice %160 {offsets = [0, 64], sizes = [16, 32], strides = [1, 1]} : vector<16x96xf32> to vector<16x32xf32>
    %164 = vector.extract_strided_slice %161 {offsets = [0, 0], sizes = [8, 32], strides = [1, 1]} : vector<16x32xf32> to vector<8x32xf32>
    %165 = vector.extract_strided_slice %162 {offsets = [0, 0], sizes = [8, 32], strides = [1, 1]} : vector<16x32xf32> to vector<8x32xf32>
    %166 = vector.extract_strided_slice %163 {offsets = [0, 0], sizes = [8, 32], strides = [1, 1]} : vector<16x32xf32> to vector<8x32xf32>
    %cst_96 = arith.constant dense<0.000000e+00> : vector<8x8xf32>
    %167 = tpu.matmul %164, %165, %cst_96 {dimension_numbers = #tpu.dot_dimension_numbers<[1], [1], [0], [0], [0, 0, 1, 0], [], []>} : vector<8x32xf32>, vector<8x32xf32>, vector<8x8xf32> -> vector<8x8xf32>
    %168 = vector.broadcast %1 : f32 to vector<8x8xf32>
    %169 = arith.mulf %167, %168 : vector<8x8xf32>
    %cst_97 = arith.constant dense<0xFF800000> : vector<8xf32>
    %170 = vector.multi_reduction <maximumf>, %169, %cst_97 [1] : vector<8x8xf32> to vector<8xf32>
    %171 = vector.shape_cast %170 : vector<8xf32> to vector<8x1xf32>
    %172 = vector.broadcast %171 : vector<8x1xf32> to vector<8x8xf32>
    %173 = arith.subf %169, %172 : vector<8x8xf32>
    %174 = math.exp %173 : vector<8x8xf32>
    %cst_98 = arith.constant dense<0.000000e+00> : vector<8xf32>
    %175 = vector.multi_reduction <add>, %174, %cst_98 [1] : vector<8x8xf32> to vector<8xf32>
    %176 = vector.shape_cast %175 : vector<8xf32> to vector<8x1xf32>
    %177 = vector.broadcast %176 : vector<8x1xf32> to vector<8x8xf32>
    %178 = arith.divf %174, %177 : vector<8x8xf32>
    %cst_99 = arith.constant dense<0.000000e+00> : vector<8x32xf32>
    %179 = tpu.matmul %178, %166, %cst_99 {dimension_numbers = #tpu.dot_dimension_numbers<[1], [0], [0], [1], [0, 0, 1, 1], [], []>} : vector<8x8xf32>, vector<8x32xf32>, vector<8x32xf32> -> vector<8x32xf32>
    %180 = vector.extract_strided_slice %161 {offsets = [8, 0], sizes = [8, 32], strides = [1, 1]} : vector<16x32xf32> to vector<8x32xf32>
    %181 = vector.extract_strided_slice %162 {offsets = [8, 0], sizes = [8, 32], strides = [1, 1]} : vector<16x32xf32> to vector<8x32xf32>
    %182 = vector.extract_strided_slice %163 {offsets = [8, 0], sizes = [8, 32], strides = [1, 1]} : vector<16x32xf32> to vector<8x32xf32>
    %cst_100 = arith.constant dense<0.000000e+00> : vector<8x8xf32>
    %183 = tpu.matmul %180, %181, %cst_100 {dimension_numbers = #tpu.dot_dimension_numbers<[1], [1], [0], [0], [0, 0, 1, 0], [], []>} : vector<8x32xf32>, vector<8x32xf32>, vector<8x8xf32> -> vector<8x8xf32>
    %184 = vector.broadcast %1 : f32 to vector<8x8xf32>
    %185 = arith.mulf %183, %184 : vector<8x8xf32>
    %cst_101 = arith.constant dense<0xFF800000> : vector<8xf32>
    %186 = vector.multi_reduction <maximumf>, %185, %cst_101 [1] : vector<8x8xf32> to vector<8xf32>
    %187 = vector.shape_cast %186 : vector<8xf32> to vector<8x1xf32>
    %188 = vector.broadcast %187 : vector<8x1xf32> to vector<8x8xf32>
    %189 = arith.subf %185, %188 : vector<8x8xf32>
    %190 = math.exp %189 : vector<8x8xf32>
    %cst_102 = arith.constant dense<0.000000e+00> : vector<8xf32>
    %191 = vector.multi_reduction <add>, %190, %cst_102 [1] : vector<8x8xf32> to vector<8xf32>
    %192 = vector.shape_cast %191 : vector<8xf32> to vector<8x1xf32>
    %193 = vector.broadcast %192 : vector<8x1xf32> to vector<8x8xf32>
    %194 = arith.divf %190, %193 : vector<8x8xf32>
    %cst_103 = arith.constant dense<0.000000e+00> : vector<8x32xf32>
    %195 = tpu.matmul %194, %182, %cst_103 {dimension_numbers = #tpu.dot_dimension_numbers<[1], [0], [0], [1], [0, 0, 1, 1], [], []>} : vector<8x8xf32>, vector<8x32xf32>, vector<8x32xf32> -> vector<8x32xf32>
    %196 = tpu.concatenate %179, %195 in 0 : vector<8x32xf32>, vector<8x32xf32> -> vector<16x32xf32>
    %cst_104 = arith.constant dense<0.000000e+00> : vector<16x32xf32>
    %197 = tpu.matmul %196, %139, %cst_104 {dimension_numbers = #tpu.dot_dimension_numbers<[1], [0], [0], [1], [0, 0, 1, 1], [], []>} : vector<16x32xf32>, vector<32x32xf32>, vector<16x32xf32> -> vector<16x32xf32>
    %198 = vector.broadcast %147 : vector<1x32xf32> to vector<16x32xf32>
    %199 = arith.addf %197, %198 : vector<16x32xf32>
    %200 = arith.addf %133, %199 : vector<16x32xf32>
    %cst_105 = arith.constant dense<0.000000e+00> : vector<16xf32>
    %201 = vector.multi_reduction <add>, %200, %cst_105 [1] : vector<16x32xf32> to vector<16xf32>
    %202 = vector.shape_cast %201 : vector<16xf32> to vector<16x1xf32>
    %cst_106 = arith.constant 3.200000e+01 : f32
    %203 = vector.broadcast %cst_106 : f32 to vector<16x1xf32>
    %204 = arith.divf %202, %203 : vector<16x1xf32>
    %205 = vector.broadcast %204 : vector<16x1xf32> to vector<16x32xf32>
    %206 = arith.subf %200, %205 : vector<16x32xf32>
    %207 = arith.mulf %206, %206 : vector<16x32xf32>
    %cst_107 = arith.constant dense<0.000000e+00> : vector<16xf32>
    %208 = vector.multi_reduction <add>, %207, %cst_107 [1] : vector<16x32xf32> to vector<16xf32>
    %209 = vector.shape_cast %208 : vector<16xf32> to vector<16x1xf32>
    %cst_108 = arith.constant 3.200000e+01 : f32
    %210 = vector.broadcast %cst_108 : f32 to vector<16x1xf32>
    %211 = arith.divf %209, %210 : vector<16x1xf32>
    %212 = vector.broadcast %204 : vector<16x1xf32> to vector<16x32xf32>
    %213 = arith.subf %200, %212 : vector<16x32xf32>
    %cst_109 = arith.constant 9.99999996E-13 : f32
    %214 = vector.broadcast %cst_109 : f32 to vector<16x1xf32>
    %215 = arith.addf %211, %214 : vector<16x1xf32>
    %216 = math.rsqrt %215 : vector<16x1xf32>
    %217 = vector.broadcast %216 : vector<16x1xf32> to vector<16x32xf32>
    %218 = arith.mulf %213, %217 : vector<16x32xf32>
    %219 = vector.broadcast %149 : vector<1x32xf32> to vector<16x32xf32>
    %220 = arith.mulf %218, %219 : vector<16x32xf32>
    %221 = vector.broadcast %151 : vector<1x32xf32> to vector<16x32xf32>
    %222 = arith.addf %220, %221 : vector<16x32xf32>
    %cst_110 = arith.constant dense<0.000000e+00> : vector<16x128xf32>
    %223 = tpu.matmul %222, %141, %cst_110 {dimension_numbers = #tpu.dot_dimension_numbers<[1], [0], [0], [1], [0, 0, 1, 1], [], []>} : vector<16x32xf32>, vector<32x128xf32>, vector<16x128xf32> -> vector<16x128xf32>
    %224 = vector.broadcast %143 : vector<1x128xf32> to vector<16x128xf32>
    %225 = arith.addf %223, %224 : vector<16x128xf32>
    %226 = arith.mulf %225, %225 : vector<16x128xf32>
    %227 = arith.mulf %225, %226 : vector<16x128xf32>
    %cst_111 = arith.constant 4.471500e-02 : f32
    %228 = vector.broadcast %cst_111 : f32 to vector<16x128xf32>
    %229 = arith.mulf %228, %227 : vector<16x128xf32>
    %230 = arith.addf %225, %229 : vector<16x128xf32>
    %cst_112 = arith.constant 0.797884583 : f32
    %231 = vector.broadcast %cst_112 : f32 to vector<16x128xf32>
    %232 = arith.mulf %231, %230 : vector<16x128xf32>
    %233 = math.tanh %232 : vector<16x128xf32>
    %cst_113 = arith.constant 1.000000e+00 : f32
    %234 = vector.broadcast %cst_113 : f32 to vector<16x128xf32>
    %235 = arith.addf %234, %233 : vector<16x128xf32>
    %cst_114 = arith.constant 5.000000e-01 : f32
    %236 = vector.broadcast %cst_114 : f32 to vector<16x128xf32>
    %237 = arith.mulf %236, %235 : vector<16x128xf32>
    %238 = arith.mulf %225, %237 : vector<16x128xf32>
    %cst_115 = arith.constant dense<0.000000e+00> : vector<16x32xf32>
    %239 = tpu.matmul %238, %145, %cst_115 {dimension_numbers = #tpu.dot_dimension_numbers<[1], [0], [0], [1], [0, 0, 1, 1], [], []>} : vector<16x128xf32>, vector<128x32xf32>, vector<16x32xf32> -> vector<16x32xf32>
    %240 = vector.broadcast %153 : vector<1x32xf32> to vector<16x32xf32>
    %241 = arith.addf %239, %240 : vector<16x32xf32>
    %242 = arith.addf %222, %241 : vector<16x32xf32>
    %cst_116 = arith.constant dense<0.000000e+00> : vector<16xf32>
    %243 = vector.multi_reduction <add>, %242, %cst_116 [1] : vector<16x32xf32> to vector<16xf32>
    %244 = vector.shape_cast %243 : vector<16xf32> to vector<16x1xf32>
    %cst_117 = arith.constant 3.200000e+01 : f32
    %245 = vector.broadcast %cst_117 : f32 to vector<16x1xf32>
    %246 = arith.divf %244, %245 : vector<16x1xf32>
    %247 = vector.broadcast %246 : vector<16x1xf32> to vector<16x32xf32>
    %248 = arith.subf %242, %247 : vector<16x32xf32>
    %249 = arith.mulf %248, %248 : vector<16x32xf32>
    %cst_118 = arith.constant dense<0.000000e+00> : vector<16xf32>
    %250 = vector.multi_reduction <add>, %249, %cst_118 [1] : vector<16x32xf32> to vector<16xf32>
    %251 = vector.shape_cast %250 : vector<16xf32> to vector<16x1xf32>
    %cst_119 = arith.constant 3.200000e+01 : f32
    %252 = vector.broadcast %cst_119 : f32 to vector<16x1xf32>
    %253 = arith.divf %251, %252 : vector<16x1xf32>
    %254 = vector.broadcast %246 : vector<16x1xf32> to vector<16x32xf32>
    %255 = arith.subf %242, %254 : vector<16x32xf32>
    %cst_120 = arith.constant 9.99999996E-13 : f32
    %256 = vector.broadcast %cst_120 : f32 to vector<16x1xf32>
    %257 = arith.addf %253, %256 : vector<16x1xf32>
    %258 = math.rsqrt %257 : vector<16x1xf32>
    %259 = vector.broadcast %258 : vector<16x1xf32> to vector<16x32xf32>
    %260 = arith.mulf %255, %259 : vector<16x32xf32>
    %261 = vector.broadcast %155 : vector<1x32xf32> to vector<16x32xf32>
    %262 = arith.mulf %260, %261 : vector<16x32xf32>
    %263 = vector.broadcast %157 : vector<1x32xf32> to vector<16x32xf32>
    %264 = arith.addf %262, %263 : vector<16x32xf32>
    %265 = vector.extract_strided_slice %264 {offsets = [0, 0], sizes = [1, 32], strides = [1, 1]} : vector<16x32xf32> to vector<1x32xf32>
    %266 = vector.extract_strided_slice %264 {offsets = [8, 0], sizes = [1, 32], strides = [1, 1]} : vector<16x32xf32> to vector<1x32xf32>
    %267 = tpu.concatenate %265, %266 in 0 : vector<1x32xf32>, vector<1x32xf32> -> vector<2x32xf32>
    %c0_121 = arith.constant 0 : index
    %c0_122 = arith.constant 0 : index
    %268 = vector.load %arg8[%c0_121, %c0_122] : memref<32x16xf32, #tpu.memory_space<vmem>>, vector<32x16xf32>
    %cst_123 = arith.constant dense<0.000000e+00> : vector<2x16xf32>
    %269 = tpu.matmul %267, %268, %cst_123 {dimension_numbers = #tpu.dot_dimension_numbers<[1], [0], [0], [1], [0, 0, 1, 1], [], []>} : vector<2x32xf32>, vector<32x16xf32>, vector<2x16xf32> -> vector<2x16xf32>
    %c0_124 = arith.constant 0 : index
    %c0_125 = arith.constant 0 : index
    %270 = vector.load %arg9[%c0_124, %c0_125] : memref<1x16xf32, #tpu.memory_space<vmem>>, vector<1x16xf32>
    %271 = vector.broadcast %270 : vector<1x16xf32> to vector<2x16xf32>
    %272 = arith.addf %269, %271 : vector<2x16xf32>
    %273 = arith.mulf %272, %272 : vector<2x16xf32>
    %cst_126 = arith.constant dense<0.000000e+00> : vector<2xf32>
    %274 = vector.multi_reduction <add>, %273, %cst_126 [1] : vector<2x16xf32> to vector<2xf32>
    %275 = vector.shape_cast %274 : vector<2xf32> to vector<2x1xf32>
    %cst_127 = arith.constant 1.000000e-24 : f32
    %276 = vector.broadcast %cst_127 : f32 to vector<2x1xf32>
    %277 = arith.maximumf %275, %276 : vector<2x1xf32>
    %278 = math.rsqrt %277 : vector<2x1xf32>
    %279 = vector.broadcast %278 : vector<2x1xf32> to vector<2x16xf32>
    %280 = arith.mulf %272, %279 : vector<2x16xf32>
    %c0_128 = arith.constant 0 : index
    %c0_129 = arith.constant 0 : index
    %281 = vector.load %arg10[%c0_128, %c0_129] : memref<2x16xf32, #tpu.memory_space<vmem>>, vector<2x16xf32>
    tpu.vector_store %arg10[%c0_128, %c0_129], %280 {strides = array<i32>} : memref<2x16xf32, #tpu.memory_space<vmem>>, vector<2x16xf32>,
    return
  }
}

</mosaic_0001>

<bundles_post_ra>
// kernel: tpu_custom_call.1
= control target key start
LH: loop header
LB: loop body
LE: loop exit
PB: predicated region body
PF: predicated region fallthrough
CT: control target
= control target key end

     0   :  { %vm80_vm0 = vcmask 261120   ;;  %s2737_s0 = inlined_call_operand.vmem [shape: f32[16,32], index: 0, kind: input, shape index: {}]   ;;  %s2738_s1 = inlined_call_operand.vmem [shape: f32[2,32,96], index: 1, kind: input, shape index: {}]   ;;  %s2739_s2 = inlined_call_operand.vmem [shape: f32[2,1,96], index: 2, kind: input, shape index: {}]   ;;  %s2740_s3 = inlined_call_operand.vmem [shape: f32[2,32,32], index: 3, kind: input, shape index: {}]   ;;  %s2741_s4 = inlined_call_operand.vmem [shape: f32[2,32,128], index: 4, kind: input, shape index: {}]   ;;  %s2742_s5 = inlined_call_operand.vmem [shape: f32[2,1,128], index: 5, kind: input, shape index: {}]   ;;  %s2743_s6 = inlined_call_operand.vmem [shape: f32[2,128,32], index: 6, kind: input, shape index: {}]   ;;  %s2744_s7 = inlined_call_operand.vmem [shape: f32[2,6,32], index: 7, kind: input, shape index: {}]   ;;  %s2745_s8 = inlined_call_operand.vmem [shape: f32[32,16], index: 8, kind: input, shape index: {}]   ;;  %s2746_s9 = inlined_call_operand.vmem [shape: f32[1,16], index: 9, kind: input, shape index: {}]   ;;  %s2747_s10 = inlined_call_operand.hbm [shape: f32[2,16], index: 10, kind: output, shape index: {}]  }
   0x1   :  { %v38_v0 = vld [vmem:[%s2738_s1] sm:$0xff]  ;;  %v39_v1 = vld [vmem:[%s2738_s1 + $0x8] sm:$0xff]  ;;  %v40_v2 = vld [vmem:[%s2738_s1 + $0x10] sm:$0xff] }
   0x2   :  { %v2122_v3 = vpack.c.bf16 %v39_v1, %v38_v0  ;;  %v41_v4 = vld [vmem:[%s2738_s1 + $0x18] sm:$0xff]  ;;  %v2388_v5 = vld [vmem:[%s2737_s0] sm:$0xff] }
   0x3   :  { %v2126_v6 = vpack.c.bf16 %v41_v4, %v40_v2  ;;  %1943 = vmatprep.mubr.msk.f32.mxu0 %vm80_vm0, %v2388_v5 }
   0x4   :  { %15 = vsyncpa [#allocation3], 0  ;;  %2123 = vmatprep.subr.bf16.mxu0 %v2122_v3  ;;  %v2395_v7 = vld [vmem:[%s2737_s0 + $0x8] sm:$0xff]  ;;  %v2312_v8 = vmov 0.0   ;;  %vm2313_vm1 = vmmov 0   ;;  %s2314_s0 = smov 96  }
   0x5   :  { %2125 = vmatpush3.bf16.msra.mxu0 %v2122_v3  ;;  %1946 = vmatprep.subr.mxu1 %v2312_v8  ;;  %v1764_v9 = vld [vmem:[%s2739_s2] ss:$0 sm:$0xff]  ;;  %vm240_vm2 = vcmask 64512   ;;  %s2315_s27 = smov 64   ;;  %v44_v35 = vld [vmem:[%s2740_s3 + $0x8] sm:$0xff]  ;;  %v45_v45 = vld [vmem:[%s2740_s3 + $0x10] sm:$0xff] }
   0x6   :  { %2127 = vmatprep.subr.bf16.mxu0 %v2126_v6  ;;  %1948 = vmatprep.mubr.msk.f32.mxu1 %vm2313_vm1, %v2312_v8  ;;  %v43_v34 = vld [vmem:[%s2740_s3] sm:$0xff]  ;;  %v46_v46 = vld [vmem:[%s2740_s3 + $0x18] sm:$0xff]  ;;  %vm1655_vm3 = vcmask 1040384   ;;  %vm1742_vm4 = vcmask 123904  }
   0x7   :  { %v2130_v36 = vpack.c.bf16 %v44_v35, %v43_v34  ;;  %v2134_v47 = vpack.c.bf16 %v46_v46, %v45_v45  ;;  %v1773_v52 = vld [vmem:[%s2744_s7] ss:$0 sm:$0xff]  ;;  %v55_v34 = vld [vmem:[%s2743_s6 + $0x18] sm:$0xff] }
   0x8   :  { %v63_v46 = vld [vmem:[%s2743_s6 + $0x58] sm:$0xff] }
   0x9   :  { %2129 = vmatpush3.bf16.msra.mxu0 %v2126_v6 }
   0xa   :  { %1956 = vmatprep.subr.mxu0 %v2312_v8 }
   0xc   :  { %1944 = vmatmul.mubr.msk.f32.vlgmr.msra.gmra.mrb[0].mxu0 %vm80_vm0, %v2395_v7 }
   0xd   :  { %1958 = vmatprep.mubr.msk.f32.mxu0 %vm2313_vm1, %v2312_v8 }
  0xdf   :  { %v1945_v10 = vpop.f32.mrb[0].mxu0 }
  0xe0   :  { %v153_v11 = vpop.f32.mrb[1].mxu0  ;;  %v159_v13 = vadd.f32 %v1945_v10, %v1764_v9 }
  0xe1   :  { %v154_v12 = vadd.f32 %v1764_v9, %v153_v11  ;;  %v48_v9 = vld [vmem:[%s2741_s4 + $0x8] sm:$0xff]  ;;  %v49_v11 = vld [vmem:[%s2741_s4 + $0x10] sm:$0xff] }
  0xe3   :  { %163 = vrot.lane.b32.xlu0 %v154_v12, %s2314_s0 }
  0xe7   :  { %329 = vrot.lane.b32.xlu0 %v159_v13, %s2314_s0 }
 0x155   :  { %v164_v14 = vpop.permute.xlu0 %163 }
 0x156   :  { %1947 = vmatpush3.xpose.msk.msra.mxu1 %vm80_vm0, %v164_v14 }
 0x157   :  { %1951 = vmatprep.subr.mxu1 %v2312_v8 }
 0x159   :  { %1949 = vmatmul.mubr.msk.f32.vlgmr.msra.gmra.mrb[0].mxu1 %vm80_vm0, %v154_v12  ;;  %v330_v15 = vpop.permute.xlu0 %329 }
 0x15a   :  { %1957 = vmatpush3.xpose.msk.msra.mxu0 %vm80_vm0, %v330_v15  ;;  %1953 = vmatprep.mubr.msk.f32.mxu1 %vm2313_vm1, %v2312_v8 }
 0x15b   :  { %2131 = vmatprep.subr.bf16.mxu0 %v2130_v36 }
 0x15d   :  { %1959 = vmatmul.mubr.msk.f32.vlgmr.msra.gmra.mrb[2].mxu0 %vm80_vm0, %v159_v13 }
 0x15e   :  { %2133 = vmatpush3.bf16.msra.mxu0 %v2130_v36  ;;  %v56_v36 = vld [vmem:[%s2743_s6 + $0x20] sm:$0xff] }
 0x15f   :  { %2135 = vmatprep.subr.bf16.mxu0 %v2134_v47 }
 0x162   :  { %2137 = vmatpush3.bf16.msra.mxu0 %v2134_v47 }
 0x22c   :  { %v235_v16 = vpop.f32.mrb[0].mxu1 }
 0x22d   :  { %v239_v17 = vmul.f32 0.17677669, %v235_v16  ;;  %v1950_v18 = vpop.f32.mrb[1].mxu1 }
 0x22f   :  { %v241_v19 = vsel %vm240_vm2, %v239_v17, -inf }
 0x230   :  { %242 = vmax.xlane.f32.xlu1 %v241_v19  ;;  %v401_v20 = vpop.f32.mrb[2].mxu0 }
 0x231   :  { %v405_v21 = vmul.f32 0.17677669, %v401_v20  ;;  %v1960_v22 = vpop.f32.mrb[3].mxu0 }
 0x233   :  { %v406_v23 = vsel %vm240_vm2, %v405_v21, -inf }
 0x234   :  { %407 = vmax.xlane.f32.xlu1 %v406_v23  ;;  %v1777_v23 = vld [vmem:[%s2744_s7 + $0x2] ss:$0 sm:$0xff] }
 0x2bd   :  { %v243_v24 = vpop.xlane.xlu1 %242 }
 0x2be   :  { %v244_v25 = vsub.f32 %v239_v17, %v243_v24 }
 0x2c0   :  { %v245_v26 = vmul.f32 1.442695, %v244_v25 }
 0x2c1   :  { %v408_v27 = vpop.xlane.xlu1 %407 }
 0x2c2   :  { %2246 = vpow2.f32 %v245_v26  ;;  %v409_v28 = vsub.f32 %v405_v21, %v408_v27  ;;  %v1776_v21 = vld [vmem:[%s2744_s7 + $0x1] ss:$0 sm:$0xff] }
 0x2c4   :  { %v410_v29 = vmul.f32 1.442695, %v409_v28 }
 0x2c6   :  { %2248 = vpow2.f32 %v410_v29 }
 0x2cc   :  { %v2247_v30 = vpop.eup %2246 }
 0x2cd   :  { %v247_v31 = vsel %vm240_vm2, %v2247_v30, 0.0 }
 0x2ce   :  { %248 = vadd.xlane.f32.xlu0 %v247_v31  ;;  %v53_v31 = vld [vmem:[%s2743_s6 + $0x8] sm:$0xff] }
 0x2d0   :  { %v2249_v32 = vpop.eup %2248 }
 0x2d1   :  { %v412_v33 = vsel %vm240_vm2, %v2249_v32, 0.0 }
 0x2d2   :  { %413 = vadd.xlane.f32.xlu1 %v412_v33  ;;  %v54_v33 = vld [vmem:[%s2743_s6 + $0x10] sm:$0xff] }
 0x2d3   :  { %v2150_v35 = vpack.c.bf16 %v55_v34, %v54_v33  ;;  %v1785_v34 = vld [vmem:[%s2738_s1 + $0x28] sm:$0xff] }
 0x2e3   :  { %252 = vrot.lane.b32.xlu1 %v154_v12, %s2315_s27  ;;  %v50_v12 = vld [vmem:[%s2741_s4 + $0x18] sm:$0xff] }
 0x2e7   :  { %417 = vrot.lane.b32.xlu1 %v159_v13, %s2315_s27  ;;  %v2142_v13 = vpack.c.bf16 %v50_v12, %v49_v11 }
 0x35b   :  { %v249_v37 = vpop.xlane.xlu0 %248 }
 0x35c   :  { %2250 = vrcp.f32 %v249_v37  ;;  %v57_v37 = vld [vmem:[%s2743_s6 + $0x28] sm:$0xff] }
 0x35f   :  { %v414_v38 = vpop.xlane.xlu1 %413 }
 0x360   :  { %2252 = vrcp.f32 %v414_v38  ;;  %v2154_v38 = vpack.c.bf16 %v57_v37, %v56_v36  ;;  %v1786_v36 = vld [vmem:[%s2738_s1 + $0x30] sm:$0xff]  ;;  %v1787_v37 = vld [vmem:[%s2738_s1 + $0x38] sm:$0xff] }
 0x363   :  { %v253_v39 = vpop.permute.xlu1 %252 }
 0x364   :  { %1952 = vmatpush3.msra.mxu1 %v253_v39  ;;  %v58_v39 = vld [vmem:[%s2743_s6 + $0x30] sm:$0xff] }
 0x365   :  { %1961 = vmatprep.subr.mxu1 %v2312_v8 }
 0x366   :  { %v2251_v40 = vpop.eup %2250 }
 0x367   :  { %v251_v41 = vmul.f32 %v2251_v40, %v2247_v30  ;;  %v418_v42 = vpop.permute.xlu1 %417  ;;  %v52_v30 = vld [vmem:[%s2743_s6] sm:$0xff]  ;;  %v59_v40 = vld [vmem:[%s2743_s6 + $0x38] sm:$0xff] }
 0x369   :  { %1954 = vmatmul.mubr.msk.f32.vlgmr.msra.gmra.mrb[2].mxu1 %vm240_vm2, %v251_v41  ;;  %v2158_v41 = vpack.c.bf16 %v59_v40, %v58_v39 }
 0x36a   :  { %v2253_v43 = vpop.eup %2252  ;;  %1962 = vmatpush3.msra.mxu1 %v418_v42  ;;  %1963 = vmatprep.mubr.msk.f32.mxu1 %vm2313_vm1, %v2312_v8  ;;  %v60_v42 = vld [vmem:[%s2743_s6 + $0x40] sm:$0xff] }
 0x36b   :  { %v416_v44 = vmul.f32 %v2253_v43, %v2249_v32  ;;  %v2146_v32 = vpack.c.bf16 %v53_v31, %v52_v30  ;;  %v61_v43 = vld [vmem:[%s2743_s6 + $0x48] sm:$0xff] }
 0x36c   :  { %v2162_v45 = vpack.c.bf16 %v61_v43, %v60_v42 }
 0x36d   :  { %1964 = vmatmul.mubr.msk.f32.vlgmr.msra.gmra.mrb[4].mxu1 %vm240_vm2, %v416_v44  ;;  %v62_v44 = vld [vmem:[%s2743_s6 + $0x50] sm:$0xff] }
 0x36e   :  { %v2166_v47 = vpack.c.bf16 %v63_v46, %v62_v44  ;;  %v1782_v46 = vld [vmem:[%s2744_s7 + $0x4] ss:$0 sm:$0xff] }
 0x43c   :  { %v324_v48 = vpop.f32.mrb[2].mxu1 }
 0x43d   :  { %v1955_v49 = vpop.f32.mrb[3].mxu1  ;;  %1974 = vmatprep.mubr.msk.f32.mxu0 %vm80_vm0, %v324_v48  ;;  %v64_v48 = vld [vmem:[%s2743_s6 + $0x60] sm:$0xff] }
 0x43e   :  { %v65_v49 = vld [vmem:[%s2743_s6 + $0x68] sm:$0xff] }
 0x440   :  { %v489_v50 = vpop.f32.mrb[4].mxu1 }
 0x441   :  { %v1965_v51 = vpop.f32.mrb[5].mxu1  ;;  %1975 = vmatmul.mubr.msk.f32.vlgmr.msra.gmra.mrb[4].mxu0 %vm80_vm0, %v489_v50  ;;  %v2170_v50 = vpack.c.bf16 %v65_v49, %v64_v48  ;;  %v1783_v48 = vld [vmem:[%s2744_s7 + $0x5] ss:$0 sm:$0xff] }
 0x442   :  { %v66_v51 = vld [vmem:[%s2743_s6 + $0x70] sm:$0xff] }
 0x514   :  { %v1976_v53 = vpop.f32.mrb[4].mxu0 }
 0x515   :  { %v575_v54 = vadd.f32 %v1976_v53, %v1773_v52  ;;  %v569_v55 = vpop.f32.mrb[5].mxu0 }
 0x516   :  { %v570_v56 = vadd.f32 %v1773_v52, %v569_v55  ;;  %v67_v52 = vld [vmem:[%s2743_s6 + $0x78] sm:$0xff] }
 0x517   :  { %v579_v57 = vadd.f32 %v575_v54, %v2395_v7  ;;  %v2174_v53 = vpack.c.bf16 %v67_v52, %v66_v51  ;;  %v1778_v54 = vld [vmem:[%s2742_s5] ss:$0 sm:$0xff] }
 0x518   :  { %v578_v58 = vadd.f32 %v570_v56, %v2388_v5  ;;  %v47_v5 = vld [vmem:[%s2741_s4] sm:$0xff] }
 0x519   :  { %v583_v59 = vsel %vm80_vm0, %v579_v57, 0.0  ;;  %v2138_v10 = vpack.c.bf16 %v48_v9, %v47_v5 }
 0x51a   :  { %584 = vadd.xlane.f32.xlu0 %v583_v59  ;;  %v580_v60 = vsel %vm80_vm0, %v578_v58, 0.0 }
 0x51b   :  { %581 = vadd.xlane.f32.xlu1 %v580_v60  ;;  %2139 = vmatprep.subr.bf16.mxu0 %v2138_v10 }
 0x51c   :  { %2141 = vmatpush3.bf16.msra.mxu0 %v2138_v10 }
 0x51d   :  { %2143 = vmatprep.subr.bf16.mxu0 %v2142_v13 }
 0x520   :  { %2145 = vmatpush3.bf16.msra.mxu0 %v2142_v13 }
 0x521   :  { %2147 = vmatprep.subr.bf16.mxu0 %v2146_v32 }
 0x5a7   :  { %v585_v61 = vpop.xlane.xlu0 %584 }
 0x5a8   :  { %v588_v62 = vmul.f32 0.03125, %v585_v61  ;;  %v582_v63 = vpop.xlane.xlu1 %581 }
 0x5a9   :  { %v587_v0 = vmul.f32 0.03125, %v582_v63 }
 0x5aa   :  { %v590_v1 = vsub.f32 %v579_v57, %v588_v62 }
 0x5ab   :  { %v589_v2 = vsub.f32 %v578_v58, %v587_v0 }
 0x5ac   :  { %v592_v6 = vmul.f32 %v590_v1, %v590_v1 }
 0x5ad   :  { %v591_v3 = vmul.f32 %v589_v2, %v589_v2 }
 0x5ae   :  { %v596_v7 = vsel %vm80_vm0, %v592_v6, 0.0 }
 0x5af   :  { %v593_v4 = vsel %vm80_vm0, %v591_v3, 0.0 }
 0x5b0   :  { %594 = vadd.xlane.f32.xlu0 %v593_v4 }
 0x5b4   :  { %597 = vadd.xlane.f32.xlu0 %v596_v7 }
 0x63d   :  { %v595_v14 = vpop.xlane.xlu0 %594 }
 0x63e   :  { %v599_v15 = vmul.f32 0.03125, %v595_v14  ;;  %v1781_v14 = vld [vmem:[%s2744_s7 + $0x3] ss:$0 sm:$0xff] }
 0x640   :  { %v601_v16 = vadd.f32 1e-12, %v599_v15 }
 0x641   :  { %v598_v17 = vpop.xlane.xlu0 %597 }
 0x642   :  { %2254 = vrsqrt.f32 %v601_v16  ;;  %v600_v18 = vmul.f32 0.03125, %v598_v17 }
 0x644   :  { %v602_v19 = vadd.f32 1e-12, %v600_v18 }
 0x646   :  { %2256 = vrsqrt.f32 %v602_v19 }
 0x64c   :  { %v2255_v20 = vpop.eup %2254 }
 0x64d   :  { %v605_v22 = vmul.f32 %v2255_v20, %v589_v2 }
 0x64f   :  { %v611_v24 = vmul.f32 %v1776_v21, %v605_v22 }
 0x650   :  { %v2257_v25 = vpop.eup %2256 }
 0x651   :  { %v606_v26 = vmul.f32 %v2257_v25, %v590_v1  ;;  %v2469_v27 = vadd.f32 %v1777_v23, %v611_v24 }
 0x653   :  { %v612_v28 = vmul.f32 %v1776_v21, %v606_v26  ;;  %1985 = vmatprep.mubr.msk.f32.mxu0 %vm80_vm0, %v2469_v27 }
 0x655   :  { %v2473_v29 = vadd.f32 %v1777_v23, %v612_v28 }
 0x657   :  { %1986 = vmatmul.mubr.msk.f32.vlgmr.msra.gmra.mrb[6].mxu0 %vm80_vm0, %v2473_v29 }
 0x658   :  { %2149 = vmatpush3.bf16.msra.mxu0 %v2146_v32 }
 0x659   :  { %2151 = vmatprep.subr.bf16.mxu0 %v2150_v35 }
 0x65c   :  { %2153 = vmatpush3.bf16.msra.mxu0 %v2150_v35 }
 0x65d   :  { %2155 = vmatprep.subr.bf16.mxu0 %v2154_v38 }
 0x660   :  { %2157 = vmatpush3.bf16.msra.mxu0 %v2154_v38  ;;  %v2182_v38 = vpack.c.bf16 %v1787_v37, %v1786_v36 }
 0x661   :  { %2159 = vmatprep.subr.bf16.mxu0 %v2158_v41 }
 0x664   :  { %2161 = vmatpush3.bf16.msra.mxu0 %v2158_v41 }
 0x665   :  { %2163 = vmatprep.subr.bf16.mxu0 %v2162_v45 }
 0x668   :  { %2165 = vmatpush3.bf16.msra.mxu0 %v2162_v45 }
 0x669   :  { %2167 = vmatprep.subr.bf16.mxu0 %v2166_v47 }
 0x66c   :  { %2169 = vmatpush3.bf16.msra.mxu0 %v2166_v47 }
 0x66d   :  { %2171 = vmatprep.subr.bf16.mxu0 %v2170_v50 }
 0x670   :  { %2173 = vmatpush3.bf16.msra.mxu0 %v2170_v50 }
 0x671   :  { %2175 = vmatprep.subr.bf16.mxu0 %v2174_v53 }
 0x674   :  { %2177 = vmatpush3.bf16.msra.mxu0 %v2174_v53 }
 0x72a   :  { %v1987_v55 = vpop.f32.mrb[6].mxu0 }
 0x72b   :  { %v703_v56 = vadd.f32 %v1987_v55, %v1778_v54  ;;  %v697_v57 = vpop.f32.mrb[7].mxu0  ;;  %v1820_v55 = vld [vmem:[%s2739_s2 + $0x1] ss:$0 sm:$0xff] }
 0x72c   :  { %v698_v58 = vadd.f32 %v1778_v54, %v697_v57 }
 0x72d   :  { %v707_v59 = vmul.f32 %v703_v56, %v703_v56 }
 0x72e   :  { %v706_v60 = vmul.f32 %v698_v58, %v698_v58 }
 0x72f   :  { %v709_v61 = vmul.f32 %v707_v59, %v703_v56 }
 0x730   :  { %v708_v62 = vmul.f32 %v706_v60, %v698_v58 }
 0x731   :  { %v711_v63 = vmul.f32 0.044715, %v709_v61 }
 0x732   :  { %v710_v0 = vmul.f32 0.044715, %v708_v62 }
 0x733   :  { %v713_v1 = vadd.f32 %v711_v63, %v703_v56 }
 0x734   :  { %v712_v2 = vadd.f32 %v710_v0, %v698_v58 }
 0x735   :  { %v715_v3 = vmul.f32 0.7978846, %v713_v1 }
 0x736   :  { %v714_v4 = vmul.f32 0.7978846, %v712_v2 }
 0x737   :  { %2258 = vtanh.f32 %v715_v3 }
 0x738   :  { %2260 = vtanh.f32 %v714_v4 }
 0x741   :  { %v2259_v6 = vpop.eup %2258 }
 0x742   :  { %v2261_v7 = vpop.eup %2260  ;;  %v719_v5 = vadd.f32 1.0, %v2259_v6 }
 0x743   :  { %v718_v9 = vadd.f32 1.0, %v2261_v7 }
 0x744   :  { %v721_v10 = vmul.f32 0.5, %v719_v5 }
 0x745   :  { %v720_v11 = vmul.f32 0.5, %v718_v9 }
 0x746   :  { %v723_v13 = vmul.f32 %v721_v10, %v703_v56 }
 0x747   :  { %v722_v12 = vmul.f32 %v720_v11, %v698_v58 }
 0x749   :  { %2020 = vmatprep.mubr.f32.mxu0 %v722_v12 }
 0x74a   :  { %2021 = vmatmul.mubr.f32.vlgmr.msra.gmra.mrb[8].mxu0 %v723_v13 }
 0x81d   :  { %v2022_v15 = vpop.f32.mrb[8].mxu0 }
 0x81e   :  { %v794_v16 = vpop.f32.mrb[9].mxu0  ;;  %v800_v17 = vadd.f32 %v2022_v15, %v1781_v14 }
 0x81f   :  { %v795_v18 = vadd.f32 %v1781_v14, %v794_v16 }
 0x820   :  { %v804_v21 = vadd.f32 %v800_v17, %v2473_v29  ;;  %v1784_v29 = vld [vmem:[%s2738_s1 + $0x20] sm:$0xff] }
 0x821   :  { %v803_v19 = vadd.f32 %v795_v18, %v2469_v27  ;;  %v2178_v35 = vpack.c.bf16 %v1785_v34, %v1784_v29 }
 0x822   :  { %v808_v22 = vsel %vm80_vm0, %v804_v21, 0.0 }
 0x823   :  { %v805_v20 = vsel %vm80_vm0, %v803_v19, 0.0  ;;  %2179 = vmatprep.subr.bf16.mxu1 %v2178_v35 }
 0x824   :  { %806 = vadd.xlane.f32.xlu0 %v805_v20  ;;  %2181 = vmatpush3.bf16.msra.mxu1 %v2178_v35  ;;  %v1829_v35 = vld [vmem:[%s2744_s7 + $0x8] ss:$0 sm:$0xff] }
 0x825   :  { %2183 = vmatprep.subr.bf16.mxu1 %v2182_v38 }
 0x828   :  { %809 = vadd.xlane.f32.xlu0 %v808_v22  ;;  %2185 = vmatpush3.bf16.msra.mxu1 %v2182_v38 }
 0x829   :  { %2034 = vmatprep.subr.mxu1 %v2312_v8 }
 0x8b1   :  { %v807_v23 = vpop.xlane.xlu0 %806 }
 0x8b2   :  { %v811_v24 = vmul.f32 0.03125, %v807_v23 }
 0x8b4   :  { %v813_v25 = vsub.f32 %v803_v19, %v811_v24  ;;  %v1789_v24 = vld [vmem:[%s2740_s3 + $0x20] sm:$0xff] }
 0x8b5   :  { %v810_v26 = vpop.xlane.xlu0 %809 }
 0x8b6   :  { %v812_v28 = vmul.f32 0.03125, %v810_v26  ;;  %v815_v30 = vmul.f32 %v813_v25, %v813_v25 }
 0x8b8   :  { %v814_v31 = vsub.f32 %v804_v21, %v812_v28  ;;  %v817_v32 = vsel %vm80_vm0, %v815_v30, 0.0  ;;  %v1791_v30 = vld [vmem:[%s2740_s3 + $0x30] sm:$0xff] }
 0x8b9   :  { %818 = vadd.xlane.f32.xlu0 %v817_v32 }
 0x8ba   :  { %v816_v33 = vmul.f32 %v814_v31, %v814_v31 }
 0x8bc   :  { %v820_v27 = vsel %vm80_vm0, %v816_v33, 0.0 }
 0x8bd   :  { %821 = vadd.xlane.f32.xlu0 %v820_v27 }
 0x946   :  { %v819_v39 = vpop.xlane.xlu0 %818 }
 0x947   :  { %v823_v40 = vmul.f32 0.03125, %v819_v39 }
 0x949   :  { %v825_v41 = vadd.f32 1e-12, %v823_v40 }
 0x94a   :  { %v822_v42 = vpop.xlane.xlu0 %821 }
 0x94b   :  { %2262 = vrsqrt.f32 %v825_v41  ;;  %v824_v43 = vmul.f32 0.03125, %v822_v42 }
 0x94d   :  { %v826_v44 = vadd.f32 1e-12, %v824_v43 }
 0x94f   :  { %2264 = vrsqrt.f32 %v826_v44 }
 0x955   :  { %v2263_v45 = vpop.eup %2262 }
 0x956   :  { %v829_v47 = vmul.f32 %v2263_v45, %v813_v25  ;;  %v1790_v25 = vld [vmem:[%s2740_s3 + $0x28] sm:$0xff] }
 0x957   :  { %v2186_v26 = vpack.c.bf16 %v1790_v25, %v1789_v24  ;;  %v1806_v24 = vld [vmem:[%s2743_s6 + $0xc0] sm:$0xff]  ;;  %v1807_v25 = vld [vmem:[%s2743_s6 + $0xc8] sm:$0xff] }
 0x958   :  { %v835_v49 = vmul.f32 %v1782_v46, %v829_v47 }
 0x959   :  { %v2265_v50 = vpop.eup %2264 }
 0x95a   :  { %v830_v51 = vmul.f32 %v2265_v50, %v814_v31  ;;  %v2556_v52 = vadd.f32 %v1783_v48, %v835_v49  ;;  %v1792_v31 = vld [vmem:[%s2740_s3 + $0x38] sm:$0xff] }
 0x95b   :  { %v2190_v27 = vpack.c.bf16 %v1792_v31, %v1791_v30  ;;  %v1809_v30 = vld [vmem:[%s2743_s6 + $0xd8] sm:$0xff] }
 0x95c   :  { %v836_v53 = vmul.f32 %v1782_v46, %v830_v51  ;;  %2031 = vmatprep.mubr.msk.f32.mxu1 %vm80_vm0, %v2556_v52 }
 0x95e   :  { %v2560_v54 = vadd.f32 %v1783_v48, %v836_v53 }
 0x960   :  { %2032 = vmatmul.mubr.msk.f32.vlgmr.msra.gmra.mrb[6].mxu1 %vm80_vm0, %v2560_v54 }
 0x961   :  { %2036 = vmatprep.mubr.msk.f32.mxu1 %vm2313_vm1, %v2312_v8 }
 0xa33   :  { %v2033_v56 = vpop.f32.mrb[6].mxu1 }
 0xa34   :  { %v964_v57 = vpop.f32.mrb[7].mxu1  ;;  %v970_v59 = vadd.f32 %v2033_v56, %v1820_v55 }
 0xa35   :  { %v965_v58 = vadd.f32 %v1820_v55, %v964_v57  ;;  %v1794_v55 = vld [vmem:[%s2741_s4 + $0x28] sm:$0xff]  ;;  %v1795_v57 = vld [vmem:[%s2741_s4 + $0x30] sm:$0xff] }
 0xa37   :  { %974 = vrot.lane.b32.xlu0 %v965_v58, %s2314_s0 }
 0xa3b   :  { %1139 = vrot.lane.b32.xlu0 %v970_v59, %s2314_s0 }
 0xaa9   :  { %v975_v60 = vpop.permute.xlu0 %974 }
 0xaaa   :  { %2035 = vmatpush3.xpose.msk.msra.mxu1 %vm80_vm0, %v975_v60 }
 0xaab   :  { %2039 = vmatprep.subr.mxu1 %v2312_v8 }
 0xaad   :  { %2037 = vmatmul.mubr.msk.f32.vlgmr.msra.gmra.mrb[8].mxu1 %vm80_vm0, %v965_v58  ;;  %v1140_v11 = vpop.permute.xlu0 %1139 }
 0xaae   :  { %2041 = vmatprep.mubr.msk.f32.mxu1 %vm2313_vm1, %v2312_v8 }
 0xb80   :  { %v1046_v61 = vpop.f32.mrb[8].mxu1 }
 0xb81   :  { %v1050_v62 = vmul.f32 0.17677669, %v1046_v61  ;;  %v2038_v63 = vpop.f32.mrb[9].mxu1 }
 0xb83   :  { %v1051_v0 = vsel %vm240_vm2, %v1050_v62, -inf }
 0xb84   :  { %1052 = vmax.xlane.f32.xlu1 %v1051_v0 }
 0xc11   :  { %v1053_v1 = vpop.xlane.xlu1 %1052 }
 0xc12   :  { %v1054_v2 = vsub.f32 %v1050_v62, %v1053_v1 }
 0xc14   :  { %v1055_v3 = vmul.f32 1.442695, %v1054_v2 }
 0xc16   :  { %2266 = vpow2.f32 %v1055_v3  ;;  %v1832_v3 = vld [vmem:[%s2744_s7 + $0x9] ss:$0 sm:$0xff] }
 0xc20   :  { %v2267_v4 = vpop.eup %2266 }
 0xc21   :  { %v1057_v6 = vsel %vm240_vm2, %v2267_v4, 0.0 }
 0xc22   :  { %1058 = vadd.xlane.f32.xlu1 %v1057_v6  ;;  %v1833_v6 = vld [vmem:[%s2744_s7 + $0xa] ss:$0 sm:$0xff] }
 0xc33   :  { %1062 = vrot.lane.b32.xlu1 %v965_v58, %s2315_s27  ;;  %v1796_v58 = vld [vmem:[%s2741_s4 + $0x38] sm:$0xff] }
 0xcaf   :  { %v1059_v7 = vpop.xlane.xlu1 %1058 }
 0xcb0   :  { %2268 = vrcp.f32 %v1059_v7 }
 0xcb3   :  { %v1063_v5 = vpop.permute.xlu1 %1062 }
 0xcb4   :  { %2040 = vmatpush3.msra.mxu1 %v1063_v5 }
 0xcb5   :  { %2044 = vmatprep.subr.mxu1 %v2312_v8 }
 0xcba   :  { %v2269_v9 = vpop.eup %2268 }
 0xcbb   :  { %v1061_v10 = vmul.f32 %v2269_v9, %v2267_v4 }
 0xcbd   :  { %2042 = vmatmul.mubr.msk.f32.vlgmr.msra.gmra.mrb[10].mxu1 %vm240_vm2, %v1061_v10 }
 0xcbe   :  { %2045 = vmatpush3.xpose.msk.msra.mxu1 %vm80_vm0, %v1140_v11  ;;  %2046 = vmatprep.mubr.msk.f32.mxu1 %vm2313_vm1, %v2312_v8 }
 0xcbf   :  { %2049 = vmatprep.subr.mxu1 %v2312_v8 }
 0xcc1   :  { %2047 = vmatmul.mubr.msk.f32.vlgmr.msra.gmra.mrb[12].mxu1 %vm80_vm0, %v970_v59 }
 0xcc2   :  { %2051 = vmatprep.mubr.msk.f32.mxu1 %vm2313_vm1, %v2312_v8 }
 0xd90   :  { %v1134_v12 = vpop.f32.mrb[10].mxu1 }
 0xd91   :  { %v2043_v13 = vpop.f32.mrb[11].mxu1 }
 0xd92   :  { %v1798_v13 = vld [vmem:[%s2743_s6 + $0x80] sm:$0xff] }
 0xd94   :  { %v1211_v14 = vpop.f32.mrb[12].mxu1 }
 0xd95   :  { %v1215_v15 = vmul.f32 0.17677669, %v1211_v14  ;;  %v2048_v16 = vpop.f32.mrb[13].mxu1  ;;  %v1799_v14 = vld [vmem:[%s2743_s6 + $0x88] sm:$0xff] }
 0xd96   :  { %v1800_v16 = vld [vmem:[%s2743_s6 + $0x90] sm:$0xff] }
 0xd97   :  { %v1216_v17 = vsel %vm240_vm2, %v1215_v15, -inf }
 0xd98   :  { %1217 = vmax.xlane.f32.xlu0 %v1216_v17  ;;  %v1801_v17 = vld [vmem:[%s2743_s6 + $0x98] sm:$0xff] }
 0xdae   :  { %1227 = vrot.lane.b32.xlu0 %v970_v59, %s2315_s27  ;;  %v2198_v59 = vpack.c.bf16 %v1796_v58, %v1795_v57 }
 0xe25   :  { %v1218_v18 = vpop.xlane.xlu0 %1217 }
 0xe26   :  { %v1219_v19 = vsub.f32 %v1215_v15, %v1218_v18  ;;  %v2202_v15 = vpack.c.bf16 %v1799_v14, %v1798_v13  ;;  %v1802_v18 = vld [vmem:[%s2743_s6 + $0xa0] sm:$0xff] }
 0xe28   :  { %v1220_v20 = vmul.f32 1.442695, %v1219_v19  ;;  %v1803_v19 = vld [vmem:[%s2743_s6 + $0xa8] sm:$0xff] }
 0xe29   :  { %v1228_v21 = vpop.permute.xlu0 %1227 }
 0xe2a   :  { %2270 = vpow2.f32 %v1220_v20  ;;  %2050 = vmatpush3.msra.mxu1 %v1228_v21  ;;  %v2210_v20 = vpack.c.bf16 %v1803_v19, %v1802_v18  ;;  %v1804_v21 = vld [vmem:[%s2743_s6 + $0xb0] sm:$0xff]  ;;  %v1660_v19 = vld [vmem:[%s2745_s8 + $0x18] sm:$0xff] }
 0xe2b   :  { %2187 = vmatprep.subr.bf16.mxu1 %v2186_v26  ;;  %v1659_v18 = vld [vmem:[%s2745_s8 + $0x10] sm:$0xff] }
 0xe34   :  { %v2271_v22 = vpop.eup %2270 }
 0xe35   :  { %v1222_v23 = vsel %vm240_vm2, %v2271_v22, 0.0 }
 0xe36   :  { %1223 = vadd.xlane.f32.xlu1 %v1222_v23 }
 0xec3   :  { %v1224_v28 = vpop.xlane.xlu1 %1223 }
 0xec4   :  { %2272 = vrcp.f32 %v1224_v28  ;;  %v2218_v28 = vpack.c.bf16 %v1807_v25, %v1806_v24 }
 0xece   :  { %v2273_v32 = vpop.eup %2272 }
 0xecf   :  { %v1226_v33 = vmul.f32 %v2273_v32, %v2271_v22  ;;  %v1805_v22 = vld [vmem:[%s2743_s6 + $0xb8] sm:$0xff]  ;;  %v1810_v32 = vld [vmem:[%s2743_s6 + $0xe0] sm:$0xff] }
 0xed0   :  { %v2214_v23 = vpack.c.bf16 %v1805_v22, %v1804_v21 }
 0xed1   :  { %2052 = vmatmul.mubr.msk.f32.vlgmr.msra.gmra.mrb[14].mxu1 %vm240_vm2, %v1226_v33  ;;  %v1811_v33 = vld [vmem:[%s2743_s6 + $0xe8] sm:$0xff] }
 0xed2   :  { %2062 = vmatprep.mubr.msk.f32.mxu1 %vm80_vm0, %v1134_v12  ;;  %2189 = vmatpush3.bf16.msra.mxu1 %v2186_v26  ;;  %v1808_v26 = vld [vmem:[%s2743_s6 + $0xd0] sm:$0xff] }
 0xed3   :  { %2191 = vmatprep.subr.bf16.mxu1 %v2190_v27  ;;  %v2222_v31 = vpack.c.bf16 %v1809_v30, %v1808_v26  ;;  %v1838_v30 = vld [vmem:[%s2744_s7 + $0xc] ss:$0 sm:$0xff] }
 0xed6   :  { %2193 = vmatpush3.bf16.msra.mxu1 %v2190_v27  ;;  %v2226_v27 = vpack.c.bf16 %v1811_v33, %v1810_v32  ;;  %v1839_v32 = vld [vmem:[%s2744_s7 + $0xd] ss:$0 sm:$0xff] }
 0xed7   :  { %2203 = vmatprep.subr.bf16.mxu1 %v2202_v15 }
 0xfa4   :  { %v1299_v29 = vpop.f32.mrb[14].mxu1 }
 0xfa5   :  { %v2053_v34 = vpop.f32.mrb[15].mxu1  ;;  %2063 = vmatmul.mubr.msk.f32.vlgmr.msra.gmra.mrb[16].mxu1 %vm80_vm0, %v1299_v29  ;;  %v1812_v29 = vld [vmem:[%s2743_s6 + $0xf0] sm:$0xff] }
 0xfa6   :  { %2205 = vmatpush3.bf16.msra.mxu1 %v2202_v15  ;;  %v1813_v34 = vld [vmem:[%s2743_s6 + $0xf8] sm:$0xff] }
0x1078   :  { %v2064_v36 = vpop.f32.mrb[16].mxu1 }
0x1079   :  { %v1379_v37 = vpop.f32.mrb[17].mxu1  ;;  %v1385_v38 = vadd.f32 %v2064_v36, %v1829_v35  ;;  %v1834_v36 = vld [vmem:[%s2742_s5 + $0x1] ss:$0 sm:$0xff] }
0x107a   :  { %v1380_v39 = vadd.f32 %v1829_v35, %v1379_v37  ;;  %v2230_v35 = vpack.c.bf16 %v1813_v34, %v1812_v29 }
0x107b   :  { %v1389_v42 = vadd.f32 %v1385_v38, %v2560_v54  ;;  %v1793_v54 = vld [vmem:[%s2741_s4 + $0x20] sm:$0xff] }
0x107c   :  { %v1388_v40 = vadd.f32 %v1380_v39, %v2556_v52  ;;  %v2194_v56 = vpack.c.bf16 %v1794_v55, %v1793_v54 }
0x107d   :  { %v1393_v43 = vsel %vm80_vm0, %v1389_v42, 0.0 }
0x107e   :  { %v1390_v41 = vsel %vm80_vm0, %v1388_v40, 0.0  ;;  %2195 = vmatprep.subr.bf16.mxu0 %v2194_v56 }
0x107f   :  { %1391 = vadd.xlane.f32.xlu1 %v1390_v41  ;;  %2197 = vmatpush3.bf16.msra.mxu0 %v2194_v56 }
0x1080   :  { %2199 = vmatprep.subr.bf16.mxu0 %v2198_v59 }
0x1083   :  { %1394 = vadd.xlane.f32.xlu1 %v1393_v43  ;;  %2201 = vmatpush3.bf16.msra.mxu0 %v2198_v59  ;;  %v1837_v59 = vld [vmem:[%s2744_s7 + $0xb] ss:$0 sm:$0xff]  ;;  %s2317_s7 = smov [#allocation2]  }
0x1084   :  { %s1756_s18 = sshll.u32 %s2317_s7, 4  ;;  %s1757_s18 = int_to_ptr.vmem [resolvable:$true] %s1756_s18 }
0x1085   :  { %s2288_s1 = scalar_lea.vmem %s1757_s18, 32  ;;  %p2293_p1 = scmp.lt.s32.totalorder %s1757_s18, %s1757_s18 }
0x1086   :  { %p2289_p0 = scmp.ne.s32.totalorder %s1757_s18, %s2288_s1  ;;  %p2294_p2 = scmp.lt.s32.totalorder %s2288_s1, %s2288_s1 }
0x1088   :  { %p2295_p3 = por %p2294_p2, %p2293_p1 }
0x108a   :  { %p2296_p4 = pnand %p2295_p3, %p2289_p0 }
0x110c   :  { %v1392_v44 = vpop.xlane.xlu1 %1391 }
0x110d   :  { %v1396_v45 = vmul.f32 0.03125, %v1392_v44 }
0x110f   :  { %v1398_v46 = vsub.f32 %v1388_v40, %v1396_v45 }
0x1110   :  { %v1395_v47 = vpop.xlane.xlu1 %1394 }
0x1111   :  { %v1397_v48 = vmul.f32 0.03125, %v1395_v47  ;;  %v1400_v49 = vmul.f32 %v1398_v46, %v1398_v46 }
0x1113   :  { %v1399_v50 = vsub.f32 %v1389_v42, %v1397_v48  ;;  %v1402_v51 = vsel %vm80_vm0, %v1400_v49, 0.0 }
0x1114   :  { %1403 = vadd.xlane.f32.xlu1 %v1402_v51 }
0x1115   :  { %v1401_v53 = vmul.f32 %v1399_v50, %v1399_v50 }
0x1117   :  { %v1405_v52 = vsel %vm80_vm0, %v1401_v53, 0.0 }
0x1118   :  { %1406 = vadd.xlane.f32.xlu1 %v1405_v52 }
0x11a1   :  { %v1404_v60 = vpop.xlane.xlu1 %1403 }
0x11a2   :  { %v1408_v61 = vmul.f32 0.03125, %v1404_v60 }
0x11a4   :  { %v1410_v62 = vadd.f32 1e-12, %v1408_v61 }
0x11a5   :  { %v1407_v63 = vpop.xlane.xlu1 %1406 }
0x11a6   :  { %2274 = vrsqrt.f32 %v1410_v62  ;;  %v1409_v0 = vmul.f32 0.03125, %v1407_v63 }
0x11a8   :  { %v1411_v1 = vadd.f32 1e-12, %v1409_v0 }
0x11aa   :  { %2276 = vrsqrt.f32 %v1411_v1 }
0x11b0   :  { %v2275_v2 = vpop.eup %2274 }
0x11b1   :  { %v1414_v4 = vmul.f32 %v2275_v2, %v1398_v46 }
0x11b3   :  { %v1420_v7 = vmul.f32 %v1832_v3, %v1414_v4 }
0x11b4   :  { %v2277_v5 = vpop.eup %2276 }
0x11b5   :  { %v1415_v9 = vmul.f32 %v2277_v5, %v1399_v50  ;;  %v2633_v10 = vadd.f32 %v1833_v6, %v1420_v7 }
0x11b7   :  { %v1421_v11 = vmul.f32 %v1832_v3, %v1415_v9  ;;  %2073 = vmatprep.mubr.msk.f32.mxu0 %vm80_vm0, %v2633_v10 }
0x11b9   :  { %v2637_v12 = vadd.f32 %v1833_v6, %v1421_v11 }
0x11bb   :  { %2074 = vmatmul.mubr.msk.f32.vlgmr.msra.gmra.mrb[10].mxu0 %vm80_vm0, %v2637_v12 }
0x11bc   :  { %2119 = vmatprep.mubr.msk.f32.mxu0 %vm2313_vm1, %v2312_v8  ;;  %v2206_v8 = vpack.c.bf16 %v1801_v17, %v1800_v16  ;;  %v1658_v16 = vld [vmem:[%s2745_s8 + $0x8] sm:$0xff] }
0x11be   :  { %2207 = vmatprep.subr.bf16.mxu1 %v2206_v8 }
0x11bf   :  { %2209 = vmatpush3.bf16.msra.mxu1 %v2206_v8  ;;  %v2316_v8 = vmov 0.0|0.0  }
0x11c0   :  { %2211 = vmatprep.subr.bf16.mxu1 %v2210_v20  ;;  %2234 = vmatprep.subr.bf16.mxu0 %v2316_v8 }
0x11c3   :  { %2213 = vmatpush3.bf16.msra.mxu1 %v2210_v20  ;;  %v2238_v20 = vpack.c.bf16 %v1660_v19, %v1659_v18 }
0x11c4   :  { %2215 = vmatprep.subr.bf16.mxu1 %v2214_v23 }
0x11c7   :  { %2217 = vmatpush3.bf16.msra.mxu1 %v2214_v23 }
0x11c8   :  { %2219 = vmatprep.subr.bf16.mxu1 %v2218_v28 }
0x11cb   :  { %2221 = vmatpush3.bf16.msra.mxu1 %v2218_v28 }
0x11cc   :  { %2223 = vmatprep.subr.bf16.mxu1 %v2222_v31 }
0x11cf   :  { %2225 = vmatpush3.bf16.msra.mxu1 %v2222_v31 }
0x11d0   :  { %2227 = vmatprep.subr.bf16.mxu1 %v2226_v27 }
0x11d3   :  { %2229 = vmatpush3.bf16.msra.mxu1 %v2226_v27 }
0x11d4   :  { %2231 = vmatprep.subr.bf16.mxu1 %v2230_v35 }
0x11d7   :  { %2233 = vmatpush3.bf16.msra.mxu1 %v2230_v35 }
0x128e   :  { %v2075_v37 = vpop.f32.mrb[10].mxu0 }
0x128f   :  { %v1512_v38 = vadd.f32 %v2075_v37, %v1834_v36  ;;  %v1506_v39 = vpop.f32.mrb[11].mxu0 }
0x1290   :  { %v1507_v40 = vadd.f32 %v1834_v36, %v1506_v39  ;;  %v1840_v39 = vld [vmem:[%s2746_s9] ss:$0 sm:$0xff] }
0x1291   :  { %v1516_v41 = vmul.f32 %v1512_v38, %v1512_v38 }
0x1292   :  { %v1515_v42 = vmul.f32 %v1507_v40, %v1507_v40 }
0x1293   :  { %v1518_v43 = vmul.f32 %v1516_v41, %v1512_v38 }
0x1294   :  { %v1517_v44 = vmul.f32 %v1515_v42, %v1507_v40 }
0x1295   :  { %v1520_v45 = vmul.f32 0.044715, %v1518_v43 }
0x1296   :  { %v1519_v46 = vmul.f32 0.044715, %v1517_v44 }
0x1297   :  { %v1522_v47 = vadd.f32 %v1520_v45, %v1512_v38 }
0x1298   :  { %v1521_v48 = vadd.f32 %v1519_v46, %v1507_v40 }
0x1299   :  { %v1524_v49 = vmul.f32 0.7978846, %v1522_v47 }
0x129a   :  { %v1523_v50 = vmul.f32 0.7978846, %v1521_v48 }
0x129b   :  { %2278 = vtanh.f32 %v1524_v49 }
0x129c   :  { %2280 = vtanh.f32 %v1523_v50 }
0x12a5   :  { %v2279_v51 = vpop.eup %2278 }
0x12a6   :  { %v2281_v53 = vpop.eup %2280  ;;  %v1528_v52 = vadd.f32 1.0, %v2279_v51 }
0x12a7   :  { %v1527_v54 = vadd.f32 1.0, %v2281_v53 }
0x12a8   :  { %v1530_v55 = vmul.f32 0.5, %v1528_v52 }
0x12a9   :  { %v1529_v56 = vmul.f32 0.5, %v1527_v54 }
0x12aa   :  { %v1532_v58 = vmul.f32 %v1530_v55, %v1512_v38 }
0x12ab   :  { %v1531_v57 = vmul.f32 %v1529_v56, %v1507_v40 }
0x12ad   :  { %2108 = vmatprep.mubr.f32.mxu1 %v1531_v57 }
0x12ae   :  { %2109 = vmatmul.mubr.f32.vlgmr.msra.gmra.mrb[18].mxu1 %v1532_v58 }
0x1381   :  { %v2110_v60 = vpop.f32.mrb[18].mxu1 }
0x1382   :  { %v1609_v61 = vadd.f32 %v2110_v60, %v1837_v59  ;;  %v1603_v62 = vpop.f32.mrb[19].mxu1 }
0x1383   :  { %v1604_v63 = vadd.f32 %v1837_v59, %v1603_v62 }
0x1384   :  { %v1613_v0 = vadd.f32 %v1609_v61, %v2637_v12 }
0x1385   :  { %v1612_v1 = vadd.f32 %v1604_v63, %v2633_v10  ;;  %v1657_v10 = vld [vmem:[%s2745_s8] sm:$0xff] }
0x1386   :  { %v1617_v2 = vsel %vm80_vm0, %v1613_v0, 0.0  ;;  %v2235_v17 = vpack.c.bf16 %v1658_v16, %v1657_v10 }
0x1387   :  { %1618 = vadd.xlane.f32.xlu0 %v1617_v2  ;;  %v1614_v3 = vsel %vm80_vm0, %v1612_v1, 0.0 }
0x1388   :  { %1615 = vadd.xlane.f32.xlu1 %v1614_v3  ;;  %2236 = vmatpush3.bf16.msra.mxu0 %v2235_v17 }
0x1389   :  { %2237 = vmatprep.subr.bf16.mxu0 %v2316_v8 }
0x138c   :  { %2239 = vmatpush3.bf16.msra.mxu0 %v2238_v20 }
0x1414   :  { %v1619_v4 = vpop.xlane.xlu0 %1618 }
0x1415   :  { %v1621_v6 = vmul.f32 0.03125, %v1619_v4  ;;  %v1616_v7 = vpop.xlane.xlu1 %1615 }
0x1416   :  { %v1620_v5 = vmul.f32 0.03125, %v1616_v7 }
0x1417   :  { %v1623_v9 = vsub.f32 %v1613_v0, %v1621_v6 }
0x1418   :  { %v1622_v11 = vsub.f32 %v1612_v1, %v1620_v5 }
0x1419   :  { %v1625_v13 = vmul.f32 %v1623_v9, %v1623_v9 }
0x141a   :  { %v1624_v15 = vmul.f32 %v1622_v11, %v1622_v11 }
0x141b   :  { %v1629_v14 = vsel %vm80_vm0, %v1625_v13, 0.0 }
0x141c   :  { %1630 = vadd.xlane.f32.xlu1 %v1629_v14  ;;  %v1626_v12 = vsel %vm80_vm0, %v1624_v15, 0.0 }
0x1420   :  { %1627 = vadd.xlane.f32.xlu1 %v1626_v12 }
0x14a9   :  { %v1631_v21 = vpop.xlane.xlu1 %1630 }
0x14aa   :  { %v1633_v22 = vmul.f32 0.03125, %v1631_v21 }
0x14ac   :  { %v1635_v23 = vadd.f32 1e-12, %v1633_v22 }
0x14ad   :  { %v1628_v24 = vpop.xlane.xlu1 %1627 }
0x14ae   :  { %2282 = vrsqrt.f32 %v1635_v23  ;;  %v1632_v25 = vmul.f32 0.03125, %v1628_v24 }
0x14b0   :  { %v1634_v26 = vadd.f32 1e-12, %v1632_v25 }
0x14b2   :  { %2284 = vrsqrt.f32 %v1634_v26 }
0x14b8   :  { %v2283_v28 = vpop.eup %2282 }
0x14b9   :  { %v1639_v31 = vmul.f32 %v2283_v28, %v1623_v9 }
0x14bb   :  { %v1645_v33 = vmul.f32 %v1838_v30, %v1639_v31 }
0x14bc   :  { %v2285_v27 = vpop.eup %2284 }
0x14bd   :  { %v1638_v29 = vmul.f32 %v2285_v27, %v1622_v11  ;;  %v1651_v34 = vadd.f32 %v1839_v32, %v1645_v33 }
0x14bf   :  { %v1644_v35 = vmul.f32 %v1838_v30, %v1638_v29  ;;  %v1653_v37 = vrot.slane %v1651_v34, 7 }
0x14c1   :  { %v1650_v36 = vadd.f32 %v1839_v32, %v1644_v35 }
0x14c3   :  { %v1656_v38 = vsel %vm1655_vm3, %v1650_v36, %v1653_v37 }
0x14c4   :  { %2120 = vmatmul.mubr.msk.f32.vlgmr.msra.gmra.mrb[12].mxu0 %vm80_vm0, %v1656_v38 }
0x1597   :  { %v1737_v40 = vpop.f32.mrb[12].mxu0 }
0x1598   :  { %v1738_v41 = vadd.f32 %v1840_v39, %v1737_v40  ;;  %v2121_v42 = vpop.f32.mrb[13].mxu0 }
0x159a   :  { %v1741_v43 = vmul.f32 %v1738_v41, %v1738_v41 }
0x159c   :  { %v1743_v44 = vsel %vm1742_vm4, %v1741_v43, 0.0 }
0x159d   :  { %1744 = vadd.xlane.f32.xlu1 %v1743_v44 }
0x162a   :  { %v1745_v45 = vpop.xlane.xlu1 %1744 }
0x162b   :  { %v1746_v46 = vmax.f32 %v1745_v45, 1e-24 }
0x162d   :  { %2286 = vrsqrt.f32 %v1746_v46 }
0x1637   :  { %v2287_v47 = vpop.eup %2286 }
0x1638   :  { %v1748_v48 = vmul.f32 %v2287_v47, %v1738_v41 }
0x163a   :  { %1749 = vst.msk [vmem:[#allocation2] sm:$0x3] %vm1742_vm4, %v1748_v48 }
0x163b   :  { %2299 = shalt.err (!%p2296_p4)
}
0x163c   :  { %s2300_s4 = scalar_lea.hbm %s2747_s10, 32 }
0x163d   :  { %p2301_p5 = scmp.ne.s32.totalorder %s2747_s10, %s2300_s4  ;;  %p2304_p6 = scmp.lt.u32.totalorder %s2300_s4, %s2747_s10 }
0x163f   :  { %p2306_p7 = pnand %p2304_p6, %p2301_p5 }
0x1641   :  { %2309 = shalt.err (!%p2306_p7)
}
0x1642   :  { %1759 = dma.vmem_to_hbm [thread:$0]  %s1757_s18, 32, %s2747_s10, [#allocation3]  }
0x1643   :  { %2310 = dma.done.wait [#allocation3], 32  }
0x1644   :  { %2311 = vsyncadd [#allocation3], 4294967264 }
0x1645   :  { %1763 = vsyncpa [#allocation3], 1 }

</bundles_post_ra>
